<compile_context>
chip_gen: v6e
topology: v6e:2x2x1
jax: 0.10.0
libtpu: 0.0.40
codegen_flags: <defaults>
</compile_context>

<pallas_src>
import functools

import jax
import jax.numpy as jnp
from jax import lax
from jax.experimental import pallas as pl
from jax.experimental.pallas import tpu as pltpu

_HIGHEST = lax.Precision.HIGHEST


# --------------------------- fused forward kernel ----------------------------
def _fused_attention_kernel(xt_ref, wqk_ref, bqk_ref, wv_ref, bv_ref,
                            wp_ref, bp_ref, o_ref,
                            *, B, N, num_heads, key_dim, d):
    """Single grid step; the whole problem lives in VMEM.

    xt_ref : (B*N, C)        token-major input (transposed in the wrapper)
    wqk_ref: (C, 2*nh_kd)    fused [q|k] weights, pre-transposed; sqrt(key_dim)
                             baked into the q columns
    bqk_ref: (1, 2*nh_kd)
    wv_ref : (C, dh)         v weights, pre-transposed -> lane-aligned 128-wide dot
    bv_ref : (1, dh)
    wp_ref : (dh, C)         output projection, pre-transposed
    bp_ref : (1, C)
    o_ref  : (B*N, C)        token-major output slab (wrapper restores (B,C,N))
    """
    H = num_heads
    nh_kd = H * key_dim
    dh = H * d

    xt = xt_ref[...]                                                   # (B*N, C)

    # ---- projections: two lane-aligned MXU passes over all B*N tokens -------
    v = jnp.dot(xt, wv_ref[...], preferred_element_type=jnp.float32,
                precision=_HIGHEST) + bv_ref[...]                      # (B*N, dh)
    qk = jnp.dot(xt, wqk_ref[...], preferred_element_type=jnp.float32,
                 precision=_HIGHEST) + bqk_ref[...]                    # (B*N, 2*nh_kd)
    q = qk[:, :nh_kd]                                                  # (B*N, nh_kd) pre-scaled
    k = qk[:, nh_kd:]                                                  # (B*N, nh_kd)

    # ---- stack all B*H attention problems on one leading batch axis ---------
    def to_heads(t, f):  # (B*N, H*f) -> (B*H, N, f)
        return t.reshape(B, N, H, f).transpose(0, 2, 1, 3).reshape(B * H, N, f)

    q3 = to_heads(q, key_dim)                                          # (B*H, N, kd)
    k3 = to_heads(k, key_dim)                                          # (B*H, N, kd)
    v3 = to_heads(v, d)                                                # (B*H, N, d)

    # ---- one batched NT dot for ALL scores + a single softmax over the stack
    s = lax.dot_general(q3, k3, (((2,), (2,)), ((0,), (0,))),
                        preferred_element_type=jnp.float32,
                        precision=_HIGHEST)                            # (B*H, N, N)
    s = s - jnp.max(s, axis=-1, keepdims=True)
    p = jnp.exp(s)
    p = p / jnp.sum(p, axis=-1, keepdims=True)                         # exact normalization

    # ---- one batched dot for p @ v ------------------------------------------
    o3 = lax.dot_general(p, v3, (((2,), (1,)), ((0,), (0,))),
                         preferred_element_type=jnp.float32,
                         precision=_HIGHEST)                           # (B*H, N, d)

    # ---- concat heads back to a lane-dense (B*N, dh=128) slab ---------------
    o_cat = o3.reshape(B, H, N, d).transpose(0, 2, 1, 3).reshape(B * N, dh)

    # ---- output projection straight into the token-major output -------------
    y = jnp.dot(o_cat, wp_ref[...], preferred_element_type=jnp.float32,
                precision=_HIGHEST) + bp_ref[...]                      # (B*N, C)
    o_ref[...] = y.astype(o_ref.dtype)


# -------------------------------- param prep ----------------------------------
def prepare_attention_params(params, *, num_heads, key_dim, attn_ratio):
    """One-time weight fusion OUTSIDE the forward:
    - bakes the PyTorch `/(key_dim**-0.5)` logit scaling into the q weights/bias,
    - concatenates wq/wk into a single (C, 2*nh_kd) matmul operand,
    - pre-transposes wv and wp, reshapes biases for in-kernel broadcasting.
    (If casting to bf16 for v6e/v7x, do it AFTER the scaling below.)
    """
    scale = float(key_dim) ** 0.5        # reproduces torch `attn / key_dim**-0.5`
    wq = params["wq"] * scale            # (nh_kd, C)
    bq = params["bq"] * scale            # (nh_kd,)
    return {
        "wqk_t": jnp.concatenate([wq, params["wk"]], axis=0).T,        # (C, 2*nh_kd)
        "bqk": jnp.concatenate([bq, params["bk"]])[None, :],           # (1, 2*nh_kd)
        "wv_t": params["wv"].T,                                        # (C, dh)
        "bv": params["bv"][None, :],                                   # (1, dh)
        "wp_t": params["wp"].T,                                        # (dh, C)
        "bp": params["bp"][None, :],                                   # (1, C)
    }


# ------------------------------ forward wrapper --------------------------------
def attention_forward(x, fused, *, num_heads, key_dim, attn_ratio):
    """x: (B, C, N) float32 -> (B, C, N) float32, matching the PyTorch forward."""
    B, C, N = x.shape
    d = int(attn_ratio * key_dim)
    dh = d * num_heads
    nh_kd = key_dim * num_heads

    # Layout plumbing stays in XLA: token-major input, token-major output slab.
    xt = jnp.transpose(x, (0, 2, 1)).reshape(B * N, C)

    kernel = functools.partial(_fused_attention_kernel, B=B, N=N,
                               num_heads=num_heads, key_dim=key_dim, d=d)
    yt = pl.pallas_call(
        kernel,
        out_shape=jax.ShapeDtypeStruct((B * N, C), x.dtype),
        grid=(1,),                          # single step: whole problem resident in VMEM
        in_specs=[
            pl.BlockSpec((B * N, C), lambda i: (0, 0)),
            pl.BlockSpec((C, 2 * nh_kd), lambda i: (0, 0)),
            pl.BlockSpec((1, 2 * nh_kd), lambda i: (0, 0)),
            pl.BlockSpec((C, dh), lambda i: (0, 0)),
            pl.BlockSpec((1, dh), lambda i: (0, 0)),
            pl.BlockSpec((dh, C), lambda i: (0, 0)),
            pl.BlockSpec((1, C), lambda i: (0, 0)),
        ],
        out_specs=pl.BlockSpec((B * N, C), lambda i: (0, 0)),
        compiler_params=pltpu.CompilerParams(
            dimension_semantics=("arbitrary",)),  # too little work to shard across TCs here
    )(xt, fused["wqk_t"], fused["bqk"], fused["wv_t"], fused["bv"],
      fused["wp_t"], fused["bp"])

    return yt.reshape(B, N, C).transpose(0, 2, 1)       # back to (B, C, N)


# ------------------------------ reference (jnp) --------------------------------
def attention_ref(x, params, *, num_heads, key_dim, attn_ratio):
    B, C, N = x.shape
    d = int(attn_ratio * key_dim)
    dh = d * num_heads
    hp = _HIGHEST
    xt = jnp.transpose(x, (0, 2, 1))                     # (B, N, C)
    q = jnp.dot(xt, params["wq"].T, precision=hp) + params["bq"]
    k = jnp.dot(xt, params["wk"].T, precision=hp) + params["bk"]
    v = jnp.dot(xt, params["wv"].T, precision=hp) + params["bv"]
    q = q.reshape(B, N, num_heads, key_dim).transpose(0, 2, 1, 3)
    k = k.reshape(B, N, num_heads, key_dim).transpose(0, 2, 1, 3)
    v = v.reshape(B, N, num_heads, d).transpose(0, 2, 1, 3)
    s = jnp.einsum("bhid,bhjd->bhij", q, k, precision=hp) / (key_dim ** -0.5)
    p = jax.nn.softmax(s, axis=-1)
    o = jnp.einsum("bhij,bhjd->bhid", p, v, precision=hp)
    o = o.transpose(0, 2, 1, 3).reshape(B, N, dh)
    y = jnp.dot(o, params["wp"].T, precision=hp) + params["bp"]
    return y.transpose(0, 2, 1)


# ----------------------------------- main --------------------------------------
if __name__ == "__main__":
    # module hyperparameters (small)
    dim, key_dim, num_heads, attn_ratio = 32, 16, 2, 4
    d = int(attn_ratio * key_dim)        # 64
    dh = d * num_heads                   # 128
    nh_kd = key_dim * num_heads          # 32
    B, N = 2, 8                          # batch, sequence length

    key = jax.random.PRNGKey(0)
    ks = jax.random.split(key, 9)
    params = {
        "wq": 0.05 * jax.random.normal(ks[0], (nh_kd, dim), jnp.float32),
        "bq": 0.05 * jax.random.normal(ks[1], (nh_kd,), jnp.float32),
        "wk": 0.05 * jax.random.normal(ks[2], (nh_kd, dim), jnp.float32),
        "bk": 0.05 * jax.random.normal(ks[3], (nh_kd,), jnp.float32),
        "wv": 0.05 * jax.random.normal(ks[4], (dh, dim), jnp.float32),
        "bv": 0.05 * jax.random.normal(ks[5], (dh,), jnp.float32),
        "wp": 0.05 * jax.random.normal(ks[6], (dim, dh), jnp.float32),
        "bp": 0.05 * jax.random.normal(ks[7], (dim,), jnp.float32),
    }
    x = jax.random.normal(ks[8], (B, dim, N), jnp.float32)  # (B, C, N)

    # one-time weight fusion outside the jitted forward
    fused = prepare_attention_params(params, num_heads=num_heads,
                                     key_dim=key_dim, attn_ratio=attn_ratio)
    fwd = jax.jit(functools.partial(attention_forward, num_heads=num_heads,
                                    key_dim=key_dim, attn_ratio=attn_ratio))

    out = jax.block_until_ready(fwd(x, fused))

    ref = attention_ref(x, params, num_heads=num_heads,
                        key_dim=key_dim, attn_ratio=attn_ratio)
    assert out.shape == (B, dim, N)
    # All matmuls run at HIGHEST precision and softmax uses exact division, so
    # the only kernel-vs-reference delta is f32 accumulation order (<<1e-4).
    assert jnp.allclose(out, ref, atol=2e-3, rtol=2e-3), "mismatch vs reference"
    print("KERNEL_OK")
</pallas_src>

<mosaic_0001>
module attributes {stable_mosaic.version = 11 : i64} {
  func.func @_fused_attention_kernel(%arg0: i32, %arg1: memref<16x32xf32, #tpu.memory_space<vmem>>, %arg2: memref<32x64xf32, #tpu.memory_space<vmem>>, %arg3: memref<1x64xf32, #tpu.memory_space<vmem>>, %arg4: memref<32x128xf32, #tpu.memory_space<vmem>>, %arg5: memref<1x128xf32, #tpu.memory_space<vmem>>, %arg6: memref<128x32xf32, #tpu.memory_space<vmem>>, %arg7: memref<1x32xf32, #tpu.memory_space<vmem>>, %arg8: memref<16x32xf32, #tpu.memory_space<vmem>>) attributes {dimension_semantics = [#tpu.dimension_semantics<arbitrary>], iteration_bounds = array<i64: 1>, scalar_prefetch = 0 : i64, scratch_operands = 0 : i64, tpu.core_type = #tpu.core_type<tc>, window_params = [{pipeline_mode = #tpu.pipeline_mode<synchronous>, transform_indices = @transform_0, window_bounds = array<i64: 16, 32>}, {pipeline_mode = #tpu.pipeline_mode<synchronous>, transform_indices = @transform_1, window_bounds = array<i64: 32, 64>}, {pipeline_mode = #tpu.pipeline_mode<synchronous>, transform_indices = @transform_2, window_bounds = array<i64: 1, 64>}, {pipeline_mode = #tpu.pipeline_mode<synchronous>, transform_indices = @transform_3, window_bounds = array<i64: 32, 128>}, {pipeline_mode = #tpu.pipeline_mode<synchronous>, transform_indices = @transform_4, window_bounds = array<i64: 1, 128>}, {pipeline_mode = #tpu.pipeline_mode<synchronous>, transform_indices = @transform_5, window_bounds = array<i64: 128, 32>}, {pipeline_mode = #tpu.pipeline_mode<synchronous>, transform_indices = @transform_6, window_bounds = array<i64: 1, 32>}, {pipeline_mode = #tpu.pipeline_mode<synchronous>, transform_indices = @transform_7, window_bounds = array<i64: 16, 32>}]} {
    %c0 = arith.constant 0 : index
    %c0_0 = arith.constant 0 : index
    %0 = vector.load %arg1[%c0, %c0_0] : memref<16x32xf32, #tpu.memory_space<vmem>>, vector<16x32xf32>
    %c0_1 = arith.constant 0 : index
    %c0_2 = arith.constant 0 : index
    %1 = vector.load %arg4[%c0_1, %c0_2] : memref<32x128xf32, #tpu.memory_space<vmem>>, vector<32x128xf32>
    %cst = arith.constant dense<0.000000e+00> : vector<16x128xf32>
    %2 = tpu.matmul %0, %1, %cst {dimension_numbers = #tpu.dot_dimension_numbers<[1], [0], [0], [1], [0, 0, 1, 1], [], []>, precision = #tpu.contract_precision<fp32>} : vector<16x32xf32>, vector<32x128xf32>, vector<16x128xf32> -> vector<16x128xf32>
    %c0_3 = arith.constant 0 : index
    %c0_4 = arith.constant 0 : index
    %3 = vector.load %arg5[%c0_3, %c0_4] : memref<1x128xf32, #tpu.memory_space<vmem>>, vector<1x128xf32>
    %4 = vector.broadcast %3 : vector<1x128xf32> to vector<16x128xf32>
    %5 = arith.addf %2, %4 : vector<16x128xf32>
    %c0_5 = arith.constant 0 : index
    %c0_6 = arith.constant 0 : index
    %6 = vector.load %arg2[%c0_5, %c0_6] : memref<32x64xf32, #tpu.memory_space<vmem>>, vector<32x64xf32>
    %cst_7 = arith.constant dense<0.000000e+00> : vector<16x64xf32>
    %7 = tpu.matmul %0, %6, %cst_7 {dimension_numbers = #tpu.dot_dimension_numbers<[1], [0], [0], [1], [0, 0, 1, 1], [], []>, precision = #tpu.contract_precision<fp32>} : vector<16x32xf32>, vector<32x64xf32>, vector<16x64xf32> -> vector<16x64xf32>
    %c0_8 = arith.constant 0 : index
    %c0_9 = arith.constant 0 : index
    %8 = vector.load %arg3[%c0_8, %c0_9] : memref<1x64xf32, #tpu.memory_space<vmem>>, vector<1x64xf32>
    %9 = vector.broadcast %8 : vector<1x64xf32> to vector<16x64xf32>
    %10 = arith.addf %7, %9 : vector<16x64xf32>
    %11 = vector.extract_strided_slice %10 {offsets = [0, 0], sizes = [16, 32], strides = [1, 1]} : vector<16x64xf32> to vector<16x32xf32>
    %12 = vector.extract_strided_slice %10 {offsets = [0, 32], sizes = [16, 32], strides = [1, 1]} : vector<16x64xf32> to vector<16x32xf32>
    %13 = vector.shape_cast %11 : vector<16x32xf32> to vector<2x8x2x16xf32>
    %14 = tpu.transpose %13, [0, 2, 1, 3] : vector<2x8x2x16xf32> -> vector<2x2x8x16xf32>
    %15 = vector.shape_cast %14 : vector<2x2x8x16xf32> to vector<4x8x16xf32>
    %16 = vector.shape_cast %12 : vector<16x32xf32> to vector<2x8x2x16xf32>
    %17 = tpu.transpose %16, [0, 2, 1, 3] : vector<2x8x2x16xf32> -> vector<2x2x8x16xf32>
    %18 = vector.shape_cast %17 : vector<2x2x8x16xf32> to vector<4x8x16xf32>
    %19 = vector.shape_cast %5 : vector<16x128xf32> to vector<2x8x2x64xf32>
    %20 = tpu.transpose %19, [0, 2, 1, 3] : vector<2x8x2x64xf32> -> vector<2x2x8x64xf32>
    %21 = vector.shape_cast %20 : vector<2x2x8x64xf32> to vector<4x8x64xf32>
    %cst_10 = arith.constant dense<0.000000e+00> : vector<4x8x8xf32>
    %22 = tpu.matmul %15, %18, %cst_10 {dimension_numbers = #tpu.dot_dimension_numbers<[2], [2], [1], [1], [0, 0, 0, 1, 1, 1], [0], [0]>, precision = #tpu.contract_precision<fp32>} : vector<4x8x16xf32>, vector<4x8x16xf32>, vector<4x8x8xf32> -> vector<4x8x8xf32>
    %cst_11 = arith.constant dense<0xFF800000> : vector<4x8xf32>
    %23 = vector.multi_reduction <maximumf>, %22, %cst_11 [2] : vector<4x8x8xf32> to vector<4x8xf32>
    %24 = vector.shape_cast %23 : vector<4x8xf32> to vector<4x8x1xf32>
    %25 = vector.broadcast %24 : vector<4x8x1xf32> to vector<4x8x8xf32>
    %26 = arith.subf %22, %25 : vector<4x8x8xf32>
    %27 = math.exp %26 : vector<4x8x8xf32>
    %cst_12 = arith.constant dense<0.000000e+00> : vector<4x8xf32>
    %28 = vector.multi_reduction <add>, %27, %cst_12 [2] : vector<4x8x8xf32> to vector<4x8xf32>
    %29 = vector.shape_cast %28 : vector<4x8xf32> to vector<4x8x1xf32>
    %30 = vector.broadcast %29 : vector<4x8x1xf32> to vector<4x8x8xf32>
    %31 = arith.divf %27, %30 : vector<4x8x8xf32>
    %cst_13 = arith.constant dense<0.000000e+00> : vector<4x8x64xf32>
    %32 = tpu.matmul %31, %21, %cst_13 {dimension_numbers = #tpu.dot_dimension_numbers<[2], [1], [1], [2], [0, 0, 0, 1, 1, 2], [0], [0]>, precision = #tpu.contract_precision<fp32>} : vector<4x8x8xf32>, vector<4x8x64xf32>, vector<4x8x64xf32> -> vector<4x8x64xf32>
    %33 = vector.shape_cast %32 : vector<4x8x64xf32> to vector<2x2x8x64xf32>
    %34 = tpu.transpose %33, [0, 2, 1, 3] : vector<2x2x8x64xf32> -> vector<2x8x2x64xf32>
    %35 = vector.shape_cast %34 : vector<2x8x2x64xf32> to vector<16x128xf32>
    %c0_14 = arith.constant 0 : index
    %c0_15 = arith.constant 0 : index
    %36 = vector.load %arg6[%c0_14, %c0_15] : memref<128x32xf32, #tpu.memory_space<vmem>>, vector<128x32xf32>
    %cst_16 = arith.constant dense<0.000000e+00> : vector<16x32xf32>
    %37 = tpu.matmul %35, %36, %cst_16 {dimension_numbers = #tpu.dot_dimension_numbers<[1], [0], [0], [1], [0, 0, 1, 1], [], []>, precision = #tpu.contract_precision<fp32>} : vector<16x128xf32>, vector<128x32xf32>, vector<16x32xf32> -> vector<16x32xf32>
    %c0_17 = arith.constant 0 : index
    %c0_18 = arith.constant 0 : index
    %38 = vector.load %arg7[%c0_17, %c0_18] : memref<1x32xf32, #tpu.memory_space<vmem>>, vector<1x32xf32>
    %39 = vector.broadcast %38 : vector<1x32xf32> to vector<16x32xf32>
    %40 = arith.addf %37, %39 : vector<16x32xf32>
    %c0_19 = arith.constant 0 : index
    %c0_20 = arith.constant 0 : index
    %41 = vector.load %arg8[%c0_19, %c0_20] : memref<16x32xf32, #tpu.memory_space<vmem>>, vector<16x32xf32>
    tpu.vector_store %arg8[%c0_19, %c0_20], %40 {strides = array<i32>} : memref<16x32xf32, #tpu.memory_space<vmem>>, vector<16x32xf32>,
    return
  }
  func.func @transform_0(%arg0: i32) -> (i32, i32) {
    %c0_i32 = arith.constant 0 : i32
    %c0_i32_0 = arith.constant 0 : i32
    %c0_i32_1 = arith.constant 0 : i32
    return %c0_i32, %c0_i32_0 : i32, i32
  }
  func.func @transform_1(%arg0: i32) -> (i32, i32) {
    %c0_i32 = arith.constant 0 : i32
    %c0_i32_0 = arith.constant 0 : i32
    %c0_i32_1 = arith.constant 0 : i32
    return %c0_i32, %c0_i32_0 : i32, i32
  }
  func.func @transform_2(%arg0: i32) -> (i32, i32) {
    %c0_i32 = arith.constant 0 : i32
    %c0_i32_0 = arith.constant 0 : i32
    %c0_i32_1 = arith.constant 0 : i32
    return %c0_i32, %c0_i32_0 : i32, i32
  }
  func.func @transform_3(%arg0: i32) -> (i32, i32) {
    %c0_i32 = arith.constant 0 : i32
    %c0_i32_0 = arith.constant 0 : i32
    %c0_i32_1 = arith.constant 0 : i32
    return %c0_i32, %c0_i32_0 : i32, i32
  }
  func.func @transform_4(%arg0: i32) -> (i32, i32) {
    %c0_i32 = arith.constant 0 : i32
    %c0_i32_0 = arith.constant 0 : i32
    %c0_i32_1 = arith.constant 0 : i32
    return %c0_i32, %c0_i32_0 : i32, i32
  }
  func.func @transform_5(%arg0: i32) -> (i32, i32) {
    %c0_i32 = arith.constant 0 : i32
    %c0_i32_0 = arith.constant 0 : i32
    %c0_i32_1 = arith.constant 0 : i32
    return %c0_i32, %c0_i32_0 : i32, i32
  }
  func.func @transform_6(%arg0: i32) -> (i32, i32) {
    %c0_i32 = arith.constant 0 : i32
    %c0_i32_0 = arith.constant 0 : i32
    %c0_i32_1 = arith.constant 0 : i32
    return %c0_i32, %c0_i32_0 : i32, i32
  }
  func.func @transform_7(%arg0: i32) -> (i32, i32) {
    %c0_i32 = arith.constant 0 : i32
    %c0_i32_0 = arith.constant 0 : i32
    %c0_i32_1 = arith.constant 0 : i32
    return %c0_i32, %c0_i32_0 : i32, i32
  }
}

</mosaic_0001>

<bundles_post_ra>
// kernel: attention_forward.1
= control target key start
LH: loop header
LB: loop body
LE: loop exit
PB: predicated region body
PF: predicated region fallthrough
CT: control target
= control target key end

     0   :  { %vm40_vm0 = vcmask 261120   ;;  %s8442_s0 = inlined_call_operand.vmem [shape: f32[16,32], index: 0, kind: input, shape index: {}]   ;;  %s8443_s1 = inlined_call_operand.vmem [shape: f32[32,64], index: 1, kind: input, shape index: {}]   ;;  %s8444_s2 = inlined_call_operand.vmem [shape: f32[1,64], index: 2, kind: input, shape index: {}]   ;;  %s8445_s3 = inlined_call_operand.vmem [shape: f32[32,128], index: 3, kind: input, shape index: {}]   ;;  %s8446_s4 = inlined_call_operand.vmem [shape: f32[1,128], index: 4, kind: input, shape index: {}]   ;;  %s8447_s5 = inlined_call_operand.vmem [shape: f32[128,32], index: 5, kind: input, shape index: {}]   ;;  %s8448_s6 = inlined_call_operand.vmem [shape: f32[1,32], index: 6, kind: input, shape index: {}]   ;;  %s8449_s7 = inlined_call_operand.hbm [shape: f32[16,32], index: 7, kind: output, shape index: {}]  }
   0x1   :  { %v32_v0 = vld [vmem:[%s8445_s3 + $0x18] sm:$0xff]  ;;  %v31_v1 = vld [vmem:[%s8445_s3 + $0x10] sm:$0xff]  ;;  %v30_v2 = vld [vmem:[%s8445_s3 + $0x8] sm:$0xff] }
   0x2   :  { %v7440_v3 = vand.u32 4294901760, %v32_v0  ;;  %v7442_v4 = vand.u32 4294901760, %v31_v1  ;;  %v7444_v5 = vand.u32 4294901760, %v30_v2  ;;  %v29_v6 = vld [vmem:[%s8445_s3] sm:$0xff]  ;;  %v28_v8 = vld [vmem:[%s8442_s0 + $0x8] sm:$0xff] }
   0x3   :  { %v27_v7 = vld [vmem:[%s8442_s0] sm:$0xff]  ;;  %v7455_v9 = vand.u32 4294901760, %v29_v6  ;;  %v45_v11 = vsel %vm40_vm0, %v28_v8, 0 }
   0x4   :  { %v42_v10 = vsel %vm40_vm0, %v27_v7, 0  ;;  %6751 = vmatprep.subr.mxu0 %v7440_v3  ;;  %v162_v12 = vsub.f32 %v32_v0, %v7440_v3  ;;  %v169_v14 = vsub.f32 %v31_v1, %v7442_v4  ;;  %v7464_v15 = vand.u32 4294901760, %v45_v11 }
   0x5   :  { %v7461_v13 = vand.u32 4294901760, %v42_v10 }
   0x6   :  { %12 = vsyncpa [#allocation3], 0  ;;  %6752 = vmatpush3.msra.mxu0 %v7440_v3  ;;  %v176_v16 = vsub.f32 %v30_v2, %v7444_v5  ;;  %v183_v17 = vsub.f32 %v29_v6, %v7455_v9  ;;  %v163_v18 = vand.u32 4294901760, %v162_v12  ;;  %v170_v20 = vand.u32 4294901760, %v169_v14  ;;  %v578_v38 = vld [vmem:[%s8443_s1 + $0x18] sm:$0xff]  ;;  %v577_v39 = vld [vmem:[%s8443_s1 + $0x10] sm:$0xff] }
   0x7   :  { %6753 = vmatprep.subr.mxu0 %v7442_v4  ;;  %v7471_v19 = vsub.f32 %v42_v10, %v7461_v13  ;;  %v7474_v21 = vsub.f32 %v45_v11, %v7464_v15  ;;  %6770 = vmatprep.mubr.f32.mxu1 %v7461_v13  ;;  %v7512_v40 = vand.u32 4294901760, %v578_v38  ;;  %v7517_v41 = vand.u32 4294901760, %v577_v39  ;;  %v576_v42 = vld [vmem:[%s8443_s1 + $0x8] sm:$0xff]  ;;  %v575_v43 = vld [vmem:[%s8443_s1] sm:$0xff]  ;;  %s7383_s21 = smov 112   ;;  %s7387_s22 = smov 64  }
   0x8   :  { %6754 = vmatpush3.msra.mxu0 %v7442_v4  ;;  %v7478_v22 = vand.u32 4294901760, %v176_v16  ;;  %v7480_v23 = vand.u32 4294901760, %v183_v17  ;;  %v164_v24 = vsub.f32 %v162_v12, %v163_v18  ;;  %v171_v26 = vsub.f32 %v169_v14, %v170_v20  ;;  %v6456_v63 = vld [vmem:[%s8446_s4] ss:$0 sm:$0xff] }
   0x9   :  { %6755 = vmatprep.subr.mxu0 %v7444_v5  ;;  %v7484_v25 = vand.u32 4294901760, %v7471_v19  ;;  %v7487_v27 = vand.u32 4294901760, %v7474_v21  ;;  %v701_v44 = vsub.f32 %v578_v38, %v7512_v40  ;;  %v7529_v45 = vand.u32 4294901760, %v576_v42 }
   0xa   :  { %6756 = vmatpush3.msra.mxu0 %v7444_v5  ;;  %v178_v28 = vsub.f32 %v176_v16, %v7478_v22  ;;  %v185_v29 = vsub.f32 %v183_v17, %v7480_v23  ;;  %v165_v30 = vand.u32 4294901760, %v164_v24  ;;  %v172_v32 = vand.u32 4294901760, %v171_v26 }
   0xb   :  { %6757 = vmatprep.subr.mxu0 %v7455_v9  ;;  %v119_v31 = vsub.f32 %v7471_v19, %v7484_v25  ;;  %v129_v33 = vsub.f32 %v7474_v21, %v7487_v27  ;;  %v708_v46 = vsub.f32 %v577_v39, %v7517_v41  ;;  %v7535_v47 = vand.u32 4294901760, %v575_v43 }
   0xc   :  { %6758 = vmatpush3.msra.mxu0 %v7455_v9  ;;  %6762 = vmatprep.subr.mxu1 %v165_v30  ;;  %v179_v36 = vand.u32 4294901760, %v178_v28  ;;  %v186_v37 = vand.u32 4294901760, %v185_v29  ;;  %v7539_v48 = vand.u32 4294901760, %v701_v44  ;;  %v715_v49 = vsub.f32 %v576_v42, %v7529_v45 }
   0xd   :  { %v7498_v34 = vand.u32 4294901760, %v119_v31  ;;  %6773 = vmatprep.subr.mxu0 %v162_v12  ;;  %v7500_v35 = vand.u32 4294901760, %v129_v33  ;;  %6763 = vmatpush3.msra.mxu1 %v165_v30  ;;  %v709_v50 = vand.u32 4294901760, %v708_v46  ;;  %v722_v51 = vsub.f32 %v575_v43, %v7535_v47 }
   0xe   :  { %6764 = vmatprep.subr.mxu1 %v172_v32  ;;  %v703_v52 = vsub.f32 %v701_v44, %v7539_v48  ;;  %v716_v53 = vand.u32 4294901760, %v715_v49  ;;  %v8450_v62 = vmov 0.0   ;;  %vm7386_vm1 = vmmov 0  }
   0xf   :  { %6759 = vmatprep.mubr.f32.mxu0 %v7498_v34  ;;  %6765 = vmatpush3.msra.mxu1 %v172_v32  ;;  %v710_v54 = vsub.f32 %v708_v46, %v709_v50  ;;  %v723_v55 = vand.u32 4294901760, %v722_v51  ;;  %vm1838_vm2 = vcmask 130048   ;;  %vm3647_vm3 = vcmask 64512  }
  0x10   :  { %6760 = vmatmul.mubr.f32.vlgmr.msra.gmra.mxu0 %v7500_v35  ;;  %6766 = vmatprep.subr.mxu1 %v179_v36  ;;  %v704_v56 = vand.u32 4294901760, %v703_v52  ;;  %v717_v57 = vsub.f32 %v715_v49, %v716_v53  ;;  %v7385_v52 = vmov 1934713408   ;;  %vm5728_vm4 = vcmask 523264  }
  0x11   :  { %6774 = vmatpush3.msra.mxu0 %v162_v12  ;;  %6767 = vmatpush3.msra.mxu1 %v179_v36  ;;  %v711_v58 = vand.u32 4294901760, %v710_v54  ;;  %v724_v59 = vsub.f32 %v722_v51, %v723_v55 }
  0x12   :  { %6775 = vmatprep.subr.mxu0 %v169_v14  ;;  %6768 = vmatprep.subr.mxu1 %v186_v37  ;;  %v718_v60 = vand.u32 4294901760, %v717_v57 }
  0x13   :  { %6776 = vmatpush3.msra.mxu0 %v169_v14  ;;  %6769 = vmatpush3.msra.mxu1 %v186_v37  ;;  %v725_v61 = vand.u32 4294901760, %v724_v59 }
  0x14   :  { %6777 = vmatprep.subr.mxu0 %v176_v16  ;;  %6771 = vmatmul.mubr.f32.vlgmr.msra.gmra.mxu1 %v7464_v15 }
  0x15   :  { %6778 = vmatpush3.msra.mxu0 %v176_v16  ;;  %6784 = vmatprep.subr.mxu1 %v7440_v3 }
  0x16   :  { %6779 = vmatprep.subr.mxu0 %v183_v17  ;;  %6781 = vmatprep.mubr.f32.mxu0 %v7471_v19 }
  0x17   :  { %6780 = vmatpush3.msra.mxu0 %v183_v17  ;;  %6785 = vmatpush3.msra.mxu1 %v7440_v3 }
  0x18   :  { %6782 = vmatmul.mubr.f32.vlgmr.msra.gmra.mxu0 %v7474_v21  ;;  %6786 = vmatprep.subr.mxu1 %v7442_v4 }
  0x19   :  { %6795 = vmatprep.subr.mxu0 %v163_v18  ;;  %6787 = vmatpush3.msra.mxu1 %v7442_v4 }
  0x1a   :  { %6796 = vmatpush3.msra.mxu0 %v163_v18  ;;  %6788 = vmatprep.subr.mxu1 %v7444_v5 }
  0x1b   :  { %6797 = vmatprep.subr.mxu0 %v170_v20  ;;  %6789 = vmatpush3.msra.mxu1 %v7444_v5 }
  0x1c   :  { %6798 = vmatpush3.msra.mxu0 %v170_v20  ;;  %6790 = vmatprep.subr.mxu1 %v7455_v9 }
  0x1d   :  { %6799 = vmatprep.subr.mxu0 %v7478_v22  ;;  %6791 = vmatpush3.msra.mxu1 %v7455_v9 }
  0x1e   :  { %6792 = vmatprep.mubr.f32.mxu1 %v7484_v25  ;;  %6800 = vmatpush3.msra.mxu0 %v7478_v22 }
  0x1f   :  { %6793 = vmatmul.mubr.f32.vlgmr.msra.gmra.mxu1 %v7487_v27  ;;  %6801 = vmatprep.subr.mxu0 %v7480_v23 }
  0x20   :  { %6806 = vmatprep.subr.mxu1 %v7440_v3  ;;  %6802 = vmatpush3.msra.mxu0 %v7480_v23 }
  0x21   :  { %6803 = vmatprep.mubr.f32.mxu0 %v7461_v13  ;;  %6807 = vmatpush3.msra.mxu1 %v7440_v3 }
  0x22   :  { %6804 = vmatmul.mubr.f32.vlgmr.msra.gmra.mxu0 %v7464_v15  ;;  %6808 = vmatprep.subr.mxu1 %v7442_v4 }
  0x23   :  { %6817 = vmatprep.subr.mxu0 %v7512_v40  ;;  %6809 = vmatpush3.msra.mxu1 %v7442_v4 }
  0x24   :  { %6818 = vmatpush3.msra.mxu0 %v7512_v40  ;;  %6810 = vmatprep.subr.mxu1 %v7444_v5 }
  0x25   :  { %6819 = vmatprep.subr.mxu0 %v7517_v41  ;;  %6811 = vmatpush3.msra.mxu1 %v7444_v5 }
  0x26   :  { %6820 = vmatpush3.msra.mxu0 %v7517_v41  ;;  %6812 = vmatprep.subr.mxu1 %v7455_v9 }
  0x27   :  { %6821 = vmatprep.subr.mxu0 %v7529_v45  ;;  %6813 = vmatpush3.msra.mxu1 %v7455_v9 }
  0x28   :  { %6814 = vmatprep.mubr.f32.mxu1 %v7461_v13  ;;  %6822 = vmatpush3.msra.mxu0 %v7529_v45 }
  0x29   :  { %6815 = vmatmul.mubr.f32.vlgmr.msra.gmra.mxu1 %v7464_v15  ;;  %6823 = vmatprep.subr.mxu0 %v7535_v47 }
  0x2a   :  { %6828 = vmatprep.subr.mxu1 %v704_v56  ;;  %6824 = vmatpush3.msra.mxu0 %v7535_v47 }
  0x2b   :  { %6829 = vmatpush3.msra.mxu1 %v704_v56  ;;  %6825 = vmatprep.mubr.f32.mxu0 %v7498_v34 }
  0x2c   :  { %6830 = vmatprep.subr.mxu1 %v711_v58  ;;  %6839 = vmatprep.subr.mxu0 %v701_v44 }
  0x2d   :  { %6826 = vmatmul.mubr.f32.vlgmr.msra.gmra.mxu0 %v7500_v35  ;;  %6831 = vmatpush3.msra.mxu1 %v711_v58 }
  0x2e   :  { %6840 = vmatpush3.msra.mxu0 %v701_v44  ;;  %6832 = vmatprep.subr.mxu1 %v718_v60 }
  0x2f   :  { %6841 = vmatprep.subr.mxu0 %v708_v46  ;;  %6833 = vmatpush3.msra.mxu1 %v718_v60 }
  0x30   :  { %6842 = vmatpush3.msra.mxu0 %v708_v46  ;;  %6834 = vmatprep.subr.mxu1 %v725_v61 }
  0x31   :  { %6843 = vmatprep.subr.mxu0 %v715_v49  ;;  %6835 = vmatpush3.msra.mxu1 %v725_v61 }
  0x32   :  { %6836 = vmatprep.mubr.f32.mxu1 %v7461_v13  ;;  %6844 = vmatpush3.msra.mxu0 %v715_v49  ;;  %v7384_v49 = vmov 1983009808  }
  0x33   :  { %6837 = vmatmul.mubr.f32.vlgmr.msra.gmra.mxu1 %v7464_v15  ;;  %6845 = vmatprep.subr.mxu0 %v722_v51 }
  0x34   :  { %6850 = vmatprep.subr.mxu1 %v7512_v40  ;;  %6846 = vmatpush3.msra.mxu0 %v722_v51  ;;  %v1126_v51 = vlaneseq }
  0x35   :  { %6847 = vmatprep.mubr.f32.mxu0 %v7471_v19  ;;  %6851 = vmatpush3.msra.mxu1 %v7512_v40 }
  0x36   :  { %6848 = vmatmul.mubr.f32.vlgmr.msra.gmra.mxu0 %v7474_v21  ;;  %6852 = vmatprep.subr.mxu1 %v7517_v41 }
  0x37   :  { %6861 = vmatprep.subr.mxu0 %v7539_v48  ;;  %6853 = vmatpush3.msra.mxu1 %v7517_v41 }
  0x38   :  { %6862 = vmatpush3.msra.mxu0 %v7539_v48  ;;  %6854 = vmatprep.subr.mxu1 %v7529_v45 }
  0x39   :  { %6863 = vmatprep.subr.mxu0 %v709_v50  ;;  %6855 = vmatpush3.msra.mxu1 %v7529_v45 }
  0x3a   :  { %6864 = vmatpush3.msra.mxu0 %v709_v50  ;;  %6856 = vmatprep.subr.mxu1 %v7535_v47  ;;  %v1124_v50 = vunpack.c.l.s4 %v7384_v49 }
  0x3b   :  { %6865 = vmatprep.subr.mxu0 %v716_v53  ;;  %6857 = vmatpush3.msra.mxu1 %v7535_v47 }
  0x3c   :  { %6858 = vmatprep.mubr.f32.mxu1 %v7484_v25  ;;  %6866 = vmatpush3.msra.mxu0 %v716_v53  ;;  %v6457_v25 = vld [vmem:[%s8444_s2] ss:$0 sm:$0xff]  ;;  %s7382_s2 = smov 96   ;;  %v1155_v53 = vunpack.c.l.s4 %v7385_v52  ;;  %v1125_v54 = vunpack.c.0.s8 %v1124_v50 }
  0x3d   :  { %6859 = vmatmul.mubr.f32.vlgmr.msra.gmra.mxu1 %v7487_v27  ;;  %6867 = vmatprep.subr.mxu0 %v723_v55 }
  0x3e   :  { %6872 = vmatprep.subr.mxu1 %v7512_v40  ;;  %6868 = vmatpush3.msra.mxu0 %v723_v55  ;;  %v1127_v55 = vshrl.u32 %v1126_v51, 7  ;;  %v1156_v56 = vunpack.c.0.s8 %v1155_v53 }
  0x3f   :  { %6869 = vmatprep.mubr.f32.mxu0 %v7461_v13  ;;  %6873 = vmatpush3.msra.mxu1 %v7512_v40 }
  0x40   :  { %6870 = vmatmul.mubr.f32.vlgmr.msra.gmra.mxu0 %v7464_v15  ;;  %6874 = vmatprep.subr.mxu1 %v7517_v41  ;;  %v7612_v57 = vsub.s32 %v1125_v54, %v1127_v55  ;;  %v7615_v60 = vsub.s32 %v1156_v56, %v1127_v55 }
  0x41   :  { %6880 = vmatprep.mubr.f32.mxu1 %v7461_v13  ;;  %6875 = vmatpush3.msra.mxu1 %v7517_v41 }
  0x42   :  { %6876 = vmatprep.subr.mxu1 %v7529_v45  ;;  %6883 = vmatprep.subr.mxu0 %v8450_v62 }
  0x43   :  { %6877 = vmatpush3.msra.mxu1 %v7529_v45  ;;  %6885 = vmatprep.mubr.msk.f32.mxu0 %vm7386_vm1, %v8450_v62 }
  0x44   :  { %6878 = vmatprep.subr.mxu1 %v7535_v47 }
  0x45   :  { %6879 = vmatpush3.msra.mxu1 %v7535_v47 }
  0x46   :  { %6881 = vmatmul.mubr.f32.vlgmr.msra.gmra.mxu1 %v7464_v15  ;;  %6888 = vmatprep.subr.mxu1 %v8450_v62 }
  0x47   :  { %6890 = vmatprep.mubr.msk.f32.mxu1 %vm7386_vm1, %v8450_v62 }
  0xd0   :  { %v6761_v0 = vpop.f32.mrf.mxu0 }
  0xd1   :  { %v133_v1 = vadd.f32 %v6761_v0, %v6456_v63 }
  0xd2   :  { %v122_v2 = vpop.f32.mrf.mxu0 }
  0xd3   :  { %v123_v3 = vadd.f32 %v6456_v63, %v122_v2 }
  0xd4   :  { %v6772_v4 = vpop.f32.mrf.mxu1 }
  0xd5   :  { %v230_v5 = vadd.f32 %v6772_v4, %v133_v1 }
  0xd6   :  { %v223_v6 = vpop.f32.mrf.mxu1 }
  0xd7   :  { %v224_v7 = vadd.f32 %v223_v6, %v123_v3 }
  0xd8   :  { %v6783_v8 = vpop.f32.mrf.mxu0 }
  0xd9   :  { %v317_v9 = vadd.f32 %v6783_v8, %v230_v5 }
  0xda   :  { %v309_v10 = vpop.f32.mrf.mxu0 }
  0xdb   :  { %v310_v11 = vadd.f32 %v309_v10, %v224_v7 }
  0xdf   :  { %v6794_v12 = vpop.f32.mrf.mxu1 }
  0xe0   :  { %v402_v13 = vadd.f32 %v6794_v12, %v317_v9 }
  0xe1   :  { %v393_v14 = vpop.f32.mrf.mxu1 }
  0xe2   :  { %v394_v15 = vadd.f32 %v393_v14, %v310_v11  ;;  %v6805_v16 = vpop.f32.mrf.mxu0 }
  0xe3   :  { %v491_v17 = vadd.f32 %v6805_v16, %v402_v13 }
  0xe4   :  { %v484_v18 = vpop.f32.mrf.mxu0 }
  0xe5   :  { %v485_v19 = vadd.f32 %v484_v18, %v394_v15 }
  0xe9   :  { %v6816_v20 = vpop.f32.mrf.mxu1 }
  0xea   :  { %v7603_v21 = vadd.f32 %v6816_v20, %v491_v17 }
  0xeb   :  { %v565_v22 = vpop.f32.mrf.mxu1 }
  0xec   :  { %v7605_v23 = vadd.f32 %v565_v22, %v485_v19 }
  0xed   :  { %v6827_v24 = vpop.f32.mrf.mxu0 }
  0xee   :  { %v672_v32 = vadd.f32 %v6827_v24, %v6457_v25 }
  0xef   :  { %v661_v26 = vpop.f32.mrf.mxu0 }
  0xf0   :  { %v662_v28 = vadd.f32 %v6457_v25, %v661_v26 }
  0xf3   :  { %v6838_v27 = vpop.f32.mrf.mxu1 }
  0xf4   :  { %v769_v37 = vadd.f32 %v6838_v27, %v672_v32 }
  0xf5   :  { %v762_v29 = vpop.f32.mrf.mxu1 }
  0xf6   :  { %v6849_v30 = vpop.f32.mrf.mxu0  ;;  %v763_v33 = vadd.f32 %v762_v29, %v662_v28 }
  0xf7   :  { %v856_v41 = vadd.f32 %v6849_v30, %v769_v37 }
  0xf8   :  { %v848_v34 = vpop.f32.mrf.mxu0 }
  0xf9   :  { %v849_v38 = vadd.f32 %v848_v34, %v763_v33 }
  0xfd   :  { %v6860_v31 = vpop.f32.mrf.mxu1 }
  0xfe   :  { %v941_v43 = vadd.f32 %v6860_v31, %v856_v41 }
  0xff   :  { %v932_v35 = vpop.f32.mrf.mxu1 }
 0x100   :  { %v6871_v36 = vpop.f32.mrf.mxu0  ;;  %v933_v39 = vadd.f32 %v932_v35, %v849_v38 }
 0x101   :  { %v1030_v47 = vadd.f32 %v6871_v36, %v941_v43 }
 0x102   :  { %v1023_v40 = vpop.f32.mrf.mxu0 }
 0x103   :  { %v1024_v44 = vadd.f32 %v1023_v40, %v933_v39 }
 0x106   :  { %v6882_v42 = vpop.f32.mrf.mxu1 }
 0x107   :  { %v1111_v48 = vadd.f32 %v6882_v42, %v1030_v47 }
 0x108   :  { %v1104_v45 = vpop.f32.mrf.mxu1 }
 0x109   :  { %v1105_v46 = vadd.f32 %v1104_v45, %v1024_v44  ;;  %v1188_v5 = vcombine.high %v1111_v48, %v8450_v62  ;;  %v1195_v11 = vrot.slane %v1111_v48, %v7612_v57 }
 0x10b   :  { %1354 = vrot.lane.b32.xlu1 %v1105_v46, %s7382_s2  ;;  %1116 = vrot.lane.b32.xlu0 %v1105_v46, %s7383_s21  ;;  %v1122_v58 = vcombine.high %v1105_v46, %v8450_v62  ;;  %v1129_v61 = vrot.slane %v1105_v46, %v7612_v57  ;;  %v1202_v18 = vrot.slane %v1188_v5, %v7612_v57 }
 0x10d   :  { %v1136_v1 = vrot.slane %v1122_v58, %v7612_v57 }
 0x10f   :  { %1118 = vrot.lane.b32.xlu0 %v1111_v48, %s7383_s21 }
 0x113   :  { %1356 = vrot.lane.b32.xlu0 %v1111_v48, %s7382_s2 }
 0x17d   :  { %v1117_v59 = vpop.permute.xlu0 %1116  ;;  %v1355_v56 = vpop.permute.xlu1 %1354 }
 0x17e   :  { %v1137_v63 = vcombine.high %v1117_v59, %v8450_v62  ;;  %v1144_v0 = vrot.slane %v1117_v59, %v7612_v57  ;;  %1358 = vrot.lane.b32.xlu1 %v1117_v59, %s7382_s2  ;;  %v1366_v58 = vcombine.high %v1355_v56, %v8450_v62 }
 0x180   :  { %v1151_v2 = vrot.slane %v1137_v63, %v7612_v57  ;;  %v1152_v3 = vcombine.low %v1129_v61, %v1144_v0  ;;  %v1153_v4 = vcombine.high %v1129_v61, %v1144_v0  ;;  %v1373_v61 = vrot.slane %v1355_v56, %v7612_v57 }
 0x181   :  { %v1119_v6 = vpop.permute.xlu0 %1118 }
 0x182   :  { %v1160_v7 = vrot.slane %v1152_v3, %v7615_v60  ;;  %v1167_v8 = vrot.slane %v1153_v4, %v7615_v60  ;;  %v1168_v9 = vcombine.low %v1136_v1, %v1151_v2  ;;  %v1169_v10 = vcombine.high %v1136_v1, %v1151_v2  ;;  %1360 = vrot.lane.b32.xlu1 %v1119_v6, %s7382_s2 }
 0x183   :  { %v1203_v12 = vcombine.high %v1119_v6, %v8450_v62  ;;  %v1210_v13 = vrot.slane %v1119_v6, %v7612_v57  ;;  %v1380_v2 = vrot.slane %v1366_v58, %v7612_v57 }
 0x184   :  { %v1176_v14 = vrot.slane %v1168_v9, %v7615_v60  ;;  %v1183_v15 = vrot.slane %v1169_v10, %v7615_v60  ;;  %v1254_v16 = vcombine.low %v1160_v7, %v1167_v8  ;;  %v6458_v17 = vcombine.high %v1160_v7, %v1167_v8 }
 0x185   :  { %v1217_v19 = vrot.slane %v1203_v12, %v7612_v57  ;;  %v1218_v20 = vcombine.low %v1195_v11, %v1210_v13  ;;  %v1219_v22 = vcombine.high %v1195_v11, %v1210_v13  ;;  %v1357_v63 = vpop.permute.xlu0 %1356 }
 0x186   :  { %v1261_v24 = vrot.slane %v1254_v16, %v7612_v57  ;;  %v1269_v25 = vrot.slane %v6458_v17, %v7612_v57  ;;  %v1270_v26 = vcombine.low %v1176_v14, %v1183_v15  ;;  %v6459_v27 = vcombine.high %v1176_v14, %v1183_v15 }
 0x187   :  { %v1226_v28 = vrot.slane %v1218_v20, %v7615_v60  ;;  %v1233_v29 = vrot.slane %v1219_v22, %v7615_v60  ;;  %v1234_v30 = vcombine.low %v1202_v18, %v1217_v19  ;;  %v1235_v31 = vcombine.high %v1202_v18, %v1217_v19 }
 0x188   :  { %v1277_v32 = vrot.slane %v1270_v26, %v7612_v57  ;;  %v1285_v33 = vrot.slane %v6459_v27, %v7612_v57  ;;  %v1286_v34 = vcombine.low %v1261_v24, %v1269_v25  ;;  %v1432_v7 = vcombine.high %v1357_v63, %v8450_v62 }
 0x189   :  { %v1242_v35 = vrot.slane %v1234_v30, %v7615_v60  ;;  %v1249_v36 = vrot.slane %v1235_v31, %v7615_v60  ;;  %v1304_v37 = vcombine.low %v1226_v28, %v1233_v29  ;;  %v6460_v38 = vcombine.high %v1226_v28, %v1233_v29 }
 0x18a   :  { %v1294_v39 = vcombine.low %v1277_v32, %v1285_v33  ;;  %v7645_v44 = vrot.slane %v1286_v34, %v7615_v60  ;;  %v1439_v13 = vrot.slane %v1357_v63, %v7612_v57  ;;  %v1446_v22 = vrot.slane %v1432_v7, %v7612_v57 }
 0x18b   :  { %v1311_v40 = vrot.slane %v1304_v37, %v7612_v57  ;;  %v1319_v41 = vrot.slane %v6460_v38, %v7612_v57  ;;  %v1320_v42 = vcombine.low %v1242_v35, %v1249_v36  ;;  %v6461_v43 = vcombine.high %v1242_v35, %v1249_v36 }
 0x18c   :  { %v7648_v45 = vrot.slane %v1294_v39, %v7615_v60 }
 0x18d   :  { %v1327_v46 = vrot.slane %v1320_v42, %v7612_v57  ;;  %v1335_v47 = vrot.slane %v6461_v43, %v7612_v57  ;;  %v1336_v48 = vcombine.low %v1311_v40, %v1319_v41 }
 0x18e   :  { %v1302_v49 = vcombine.low %v7645_v44, %v7648_v45  ;;  %v1303_v50 = vcombine.high %v7645_v44, %v7648_v45 }
 0x18f   :  { %v1344_v51 = vcombine.low %v1327_v46, %v1335_v47  ;;  %v7661_v52 = vrot.slane %v1336_v48, %v7615_v60 }
 0x190   :  { %v1840_v6 = vsel %vm1838_vm2, %v1302_v49, 0  ;;  %v2292_v45 = vsel %vm1838_vm2, %v1303_v50, 0 }
 0x191   :  { %v7664_v53 = vrot.slane %v1344_v51, %v7615_v60  ;;  %v7683_v16 = vand.u32 4294901760, %v1840_v6 }
 0x193   :  { %v1352_v54 = vcombine.low %v7661_v52, %v7664_v53  ;;  %v1353_v55 = vcombine.high %v7661_v52, %v7664_v53  ;;  %v7693_v34 = vsub.f32 %v1840_v6, %v7683_v16 }
 0x195   :  { %v1913_v44 = vand.u32 4294901760, %v7693_v34 }
 0x1f0   :  { %v1359_v59 = vpop.permute.xlu1 %1358 }
 0x1f1   :  { %v1381_v0 = vcombine.high %v1359_v59, %v8450_v62  ;;  %v1388_v1 = vrot.slane %v1359_v59, %v7612_v57 }
 0x1f3   :  { %v1395_v3 = vrot.slane %v1381_v0, %v7612_v57  ;;  %v1396_v4 = vcombine.low %v1373_v61, %v1388_v1  ;;  %v1397_v5 = vcombine.high %v1373_v61, %v1388_v1  ;;  %v7706_v61 = vand.u32 4294901760, %v2292_v45 }
 0x1f4   :  { %v1361_v8 = vpop.permute.xlu1 %1360  ;;  %v1914_v1 = vsub.f32 %v7693_v34, %v1913_v44 }
 0x1f5   :  { %v1404_v9 = vrot.slane %v1396_v4, %v7615_v60  ;;  %v1411_v10 = vrot.slane %v1397_v5, %v7615_v60  ;;  %v1412_v11 = vcombine.low %v1380_v2, %v1395_v3  ;;  %v1413_v12 = vcombine.high %v1380_v2, %v1395_v3 }
 0x1f6   :  { %v1447_v14 = vcombine.high %v1361_v8, %v8450_v62  ;;  %v1454_v15 = vrot.slane %v1361_v8, %v7612_v57  ;;  %v1915_v7 = vand.u32 4294901760, %v1914_v1  ;;  %v7715_v8 = vsub.f32 %v2292_v45, %v7706_v61 }
 0x1f7   :  { %v1420_v17 = vrot.slane %v1412_v11, %v7615_v60  ;;  %v1427_v18 = vrot.slane %v1413_v12, %v7615_v60  ;;  %v1498_v19 = vcombine.low %v1404_v9, %v1411_v10  ;;  %v6462_v20 = vcombine.high %v1404_v9, %v1411_v10 }
 0x1f8   :  { %v1461_v24 = vrot.slane %v1447_v14, %v7612_v57  ;;  %v1462_v25 = vcombine.low %v1439_v13, %v1454_v15  ;;  %v1463_v26 = vcombine.high %v1439_v13, %v1454_v15  ;;  %v2365_v13 = vand.u32 4294901760, %v7715_v8 }
 0x1f9   :  { %v1505_v27 = vrot.slane %v1498_v19, %v7612_v57  ;;  %v1513_v28 = vrot.slane %v6462_v20, %v7612_v57  ;;  %v1514_v29 = vcombine.low %v1420_v17, %v1427_v18  ;;  %v6463_v30 = vcombine.high %v1420_v17, %v1427_v18 }
 0x1fa   :  { %v1470_v31 = vrot.slane %v1462_v25, %v7615_v60  ;;  %v1478_v32 = vcombine.low %v1446_v22, %v1461_v24  ;;  %v1479_v33 = vcombine.high %v1446_v22, %v1461_v24  ;;  %v1477_v38 = vrot.slane %v1463_v26, %v7615_v60 }
 0x1fb   :  { %v1521_v35 = vrot.slane %v1514_v29, %v7612_v57  ;;  %v1529_v36 = vrot.slane %v6463_v30, %v7612_v57  ;;  %v1530_v37 = vcombine.low %v1505_v27, %v1513_v28  ;;  %v2744_v18 = vsel %vm1838_vm2, %v1352_v54, 0 }
 0x1fc   :  { %v1486_v39 = vrot.slane %v1478_v32, %v7615_v60  ;;  %v1493_v40 = vrot.slane %v1479_v33, %v7615_v60  ;;  %v1548_v46 = vcombine.low %v1470_v31, %v1477_v38  ;;  %v6464_v47 = vcombine.high %v1470_v31, %v1477_v38 }
 0x1fd   :  { %v1538_v41 = vcombine.low %v1521_v35, %v1529_v36  ;;  %v1537_v48 = vrot.slane %v1530_v37, %v7615_v60  ;;  %v2366_v20 = vsub.f32 %v7715_v8, %v2365_v13  ;;  %v7737_v22 = vand.u32 4294901760, %v2744_v18 }
 0x1fe   :  { %v1564_v42 = vcombine.low %v1486_v39, %v1493_v40  ;;  %v6465_v43 = vcombine.high %v1486_v39, %v1493_v40  ;;  %v1555_v63 = vrot.slane %v1548_v46, %v7612_v57  ;;  %v1563_v0 = vrot.slane %v6464_v47, %v7612_v57 }
 0x1ff   :  { %v1545_v49 = vrot.slane %v1538_v41, %v7615_v60  ;;  %v2367_v25 = vand.u32 4294901760, %v2366_v20  ;;  %v7749_v26 = vsub.f32 %v2744_v18, %v7737_v22  ;;  %v3196_v32 = vsel %vm1838_vm2, %v1353_v55, 0 }
 0x200   :  { %v1571_v51 = vrot.slane %v1564_v42, %v7612_v57  ;;  %v1579_v56 = vrot.slane %v6465_v43, %v7612_v57  ;;  %v1580_v6 = vcombine.low %v1555_v63, %v1563_v0  ;;  %v7774_v35 = vand.u32 4294901760, %v3196_v32 }
 0x201   :  { %v1546_v58 = vcombine.low %v1537_v48, %v1545_v49  ;;  %v1547_v59 = vcombine.high %v1537_v48, %v1545_v49  ;;  %v2817_v29 = vand.u32 4294901760, %v7749_v26 }
 0x202   :  { %v1588_v3 = vcombine.low %v1571_v51, %v1579_v56  ;;  %v1587_v14 = vrot.slane %v1580_v6, %v7615_v60 }
 0x203   :  { %v1843_v50 = vsel %vm1838_vm2, %v1546_v58, 0  ;;  %v2295_v4 = vsel %vm1838_vm2, %v1547_v59, 0 }
 0x204   :  { %v1876_v2 = vand.u32 4294901760, %v1843_v50  ;;  %v7717_v10 = vand.u32 4294901760, %v2295_v4  ;;  %v1595_v11 = vrot.slane %v1588_v3, %v7615_v60 }
 0x206   :  { %6884 = vmatpush3.xpose.msra.mxu0 %v1876_v2  ;;  %v1953_v5 = vsub.f32 %v1843_v50, %v1876_v2  ;;  %v2405_v17 = vsub.f32 %v2295_v4, %v7717_v10  ;;  %v1596_v19 = vcombine.low %v1587_v14, %v1595_v11  ;;  %v1597_v33 = vcombine.high %v1587_v14, %v1595_v11 }
 0x207   :  { %6893 = vmatprep.subr.mxu0 %v8450_v62 }
 0x208   :  { %v1954_v9 = vand.u32 4294901760, %v1953_v5  ;;  %v2406_v24 = vand.u32 4294901760, %v2405_v17  ;;  %v2747_v54 = vsel %vm1838_vm2, %v1596_v19, 0  ;;  %v3199_v53 = vsel %vm1838_vm2, %v1597_v33, 0 }
 0x209   :  { %6886 = vmatmul.mubr.f32.vlgmr.msra.gmra.mxu0 %v1915_v7  ;;  %v7753_v28 = vand.u32 4294901760, %v2747_v54  ;;  %v3232_v37 = vand.u32 4294901760, %v3199_v53 }
 0x20a   :  { %6894 = vmatpush3.xpose.msra.mxu0 %v1953_v5  ;;  %6895 = vmatprep.mubr.msk.f32.mxu0 %vm7386_vm1, %v8450_v62  ;;  %v1955_v12 = vsub.f32 %v1953_v5, %v1954_v9  ;;  %v2407_v27 = vsub.f32 %v2405_v17, %v2406_v24 }
 0x20b   :  { %6903 = vmatprep.subr.mxu0 %v8450_v62  ;;  %v2857_v31 = vsub.f32 %v2747_v54, %v7753_v28  ;;  %v3309_v40 = vsub.f32 %v3199_v53, %v3232_v37 }
 0x20c   :  { %v1956_v15 = vand.u32 4294901760, %v1955_v12  ;;  %v2408_v30 = vand.u32 4294901760, %v2407_v27 }
 0x20d   :  { %6896 = vmatmul.mubr.f32.vlgmr.msra.gmra.mxu0 %v7693_v34  ;;  %v2818_v34 = vsub.f32 %v7749_v26, %v2817_v29  ;;  %v2858_v52 = vand.u32 4294901760, %v2857_v31  ;;  %v3310_v42 = vand.u32 4294901760, %v3309_v40 }
 0x20e   :  { %6889 = vmatpush3.xpose.msra.mxu1 %v1956_v15  ;;  %6904 = vmatpush3.xpose.msra.mxu0 %v1954_v9 }
 0x20f   :  { %6905 = vmatprep.mubr.msk.f32.mxu0 %vm7386_vm1, %v8450_v62  ;;  %6898 = vmatprep.subr.mxu1 %v8450_v62  ;;  %v2819_v55 = vand.u32 4294901760, %v2818_v34  ;;  %v2859_v36 = vsub.f32 %v2857_v31, %v2858_v52 }
 0x210   :  { %6913 = vmatprep.subr.mxu0 %v8450_v62 }
 0x211   :  { %6891 = vmatmul.mubr.f32.vlgmr.msra.gmra.mxu1 %v7683_v16  ;;  %6906 = vmatmul.mubr.f32.vlgmr.msra.gmra.mxu0 %v7683_v16  ;;  %v2860_v39 = vand.u32 4294901760, %v2859_v36 }
 0x212   :  { %6899 = vmatpush3.xpose.msra.mxu1 %v1876_v2  ;;  %6914 = vmatpush3.xpose.msra.mxu0 %v7717_v10 }
 0x213   :  { %6900 = vmatprep.mubr.msk.f32.mxu1 %vm7386_vm1, %v8450_v62  ;;  %6915 = vmatprep.mubr.msk.f32.mxu0 %vm7386_vm1, %v8450_v62 }
 0x214   :  { %6908 = vmatprep.subr.mxu1 %v8450_v62  ;;  %6923 = vmatprep.subr.mxu0 %v8450_v62 }
 0x215   :  { %6901 = vmatmul.mubr.f32.vlgmr.msra.gmra.mxu1 %v1913_v44  ;;  %6916 = vmatmul.mubr.f32.vlgmr.msra.gmra.mxu0 %v2367_v25  ;;  %v3311_v44 = vsub.f32 %v3309_v40, %v3310_v42 }
 0x216   :  { %6909 = vmatpush3.xpose.msra.mxu1 %v1876_v2  ;;  %6924 = vmatpush3.xpose.msra.mxu0 %v2405_v17 }
 0x217   :  { %6910 = vmatprep.mubr.msk.f32.mxu1 %vm7386_vm1, %v8450_v62  ;;  %6925 = vmatprep.mubr.msk.f32.mxu0 %vm7386_vm1, %v8450_v62  ;;  %v3312_v45 = vand.u32 4294901760, %v3311_v44 }
 0x218   :  { %6918 = vmatprep.subr.mxu1 %v8450_v62  ;;  %6933 = vmatprep.subr.mxu0 %v8450_v62 }
 0x219   :  { %6911 = vmatmul.mubr.f32.vlgmr.msra.gmra.mxu1 %v7683_v16  ;;  %6926 = vmatmul.mubr.f32.vlgmr.msra.gmra.mxu0 %v7715_v8  ;;  %v3268_v16 = vsub.f32 %v3196_v32, %v7774_v35 }
 0x21a   :  { %6919 = vmatpush3.xpose.msra.mxu1 %v2408_v30  ;;  %6934 = vmatpush3.xpose.msra.mxu0 %v2406_v24 }
 0x21b   :  { %6920 = vmatprep.mubr.msk.f32.mxu1 %vm7386_vm1, %v8450_v62  ;;  %6935 = vmatprep.mubr.msk.f32.mxu0 %vm7386_vm1, %v8450_v62  ;;  %v3269_v38 = vand.u32 4294901760, %v3268_v16 }
 0x21c   :  { %6928 = vmatprep.subr.mxu1 %v8450_v62  ;;  %6943 = vmatprep.subr.mxu0 %v8450_v62 }
 0x21d   :  { %6921 = vmatmul.mubr.f32.vlgmr.msra.gmra.mxu1 %v7706_v61  ;;  %6936 = vmatmul.mubr.f32.vlgmr.msra.gmra.mxu0 %v7706_v61  ;;  %v3270_v41 = vsub.f32 %v3268_v16, %v3269_v38 }
 0x21e   :  { %6929 = vmatpush3.xpose.msra.mxu1 %v7717_v10  ;;  %6944 = vmatpush3.xpose.msra.mxu0 %v7753_v28 }
 0x21f   :  { %6930 = vmatprep.mubr.msk.f32.mxu1 %vm7386_vm1, %v8450_v62  ;;  %6945 = vmatprep.mubr.msk.f32.mxu0 %vm7386_vm1, %v8450_v62  ;;  %v3271_v43 = vand.u32 4294901760, %v3270_v41 }
 0x220   :  { %6938 = vmatprep.subr.mxu1 %v8450_v62  ;;  %6953 = vmatprep.subr.mxu0 %v8450_v62 }
 0x221   :  { %6931 = vmatmul.mubr.f32.vlgmr.msra.gmra.mxu1 %v2365_v13  ;;  %6946 = vmatmul.mubr.f32.vlgmr.msra.gmra.mxu0 %v2819_v55 }
 0x222   :  { %6939 = vmatpush3.xpose.msra.mxu1 %v7717_v10  ;;  %6954 = vmatpush3.xpose.msra.mxu0 %v2857_v31 }
 0x223   :  { %6940 = vmatprep.mubr.msk.f32.mxu1 %vm7386_vm1, %v8450_v62  ;;  %6955 = vmatprep.mubr.msk.f32.mxu0 %vm7386_vm1, %v8450_v62 }
 0x224   :  { %6948 = vmatprep.subr.mxu1 %v8450_v62  ;;  %6963 = vmatprep.subr.mxu0 %v8450_v62 }
 0x225   :  { %6941 = vmatmul.mubr.f32.vlgmr.msra.gmra.mxu1 %v7706_v61  ;;  %6956 = vmatmul.mubr.f32.vlgmr.msra.gmra.mxu0 %v7749_v26 }
 0x226   :  { %6949 = vmatpush3.xpose.msra.mxu1 %v2860_v39  ;;  %6964 = vmatpush3.xpose.msra.mxu0 %v2858_v52 }
 0x227   :  { %6950 = vmatprep.mubr.msk.f32.mxu1 %vm7386_vm1, %v8450_v62  ;;  %6965 = vmatprep.mubr.msk.f32.mxu0 %vm7386_vm1, %v8450_v62 }
 0x228   :  { %6958 = vmatprep.subr.mxu1 %v8450_v62  ;;  %6973 = vmatprep.subr.mxu0 %v8450_v62 }
 0x229   :  { %6951 = vmatmul.mubr.f32.vlgmr.msra.gmra.mxu1 %v7737_v22  ;;  %6966 = vmatmul.mubr.f32.vlgmr.msra.gmra.mxu0 %v7737_v22 }
 0x22a   :  { %6959 = vmatpush3.xpose.msra.mxu1 %v7753_v28  ;;  %6974 = vmatpush3.xpose.msra.mxu0 %v3232_v37 }
 0x22b   :  { %6960 = vmatprep.mubr.msk.f32.mxu1 %vm7386_vm1, %v8450_v62  ;;  %6975 = vmatprep.mubr.msk.f32.mxu0 %vm7386_vm1, %v8450_v62 }
 0x22c   :  { %6968 = vmatprep.subr.mxu1 %v8450_v62  ;;  %6983 = vmatprep.subr.mxu0 %v8450_v62 }
 0x22d   :  { %6961 = vmatmul.mubr.f32.vlgmr.msra.gmra.mxu1 %v2817_v29  ;;  %6976 = vmatmul.mubr.f32.vlgmr.msra.gmra.mxu0 %v3271_v43 }
 0x22e   :  { %6969 = vmatpush3.xpose.msra.mxu1 %v7753_v28  ;;  %6984 = vmatpush3.xpose.msra.mxu0 %v3309_v40 }
 0x22f   :  { %6970 = vmatprep.mubr.msk.f32.mxu1 %vm7386_vm1, %v8450_v62  ;;  %6985 = vmatprep.mubr.msk.f32.mxu0 %vm7386_vm1, %v8450_v62 }
 0x230   :  { %6978 = vmatprep.subr.mxu1 %v8450_v62  ;;  %6993 = vmatprep.subr.mxu0 %v8450_v62 }
 0x231   :  { %6971 = vmatmul.mubr.f32.vlgmr.msra.gmra.mxu1 %v7737_v22  ;;  %6986 = vmatmul.mubr.f32.vlgmr.msra.gmra.mxu0 %v3268_v16 }
 0x232   :  { %6979 = vmatpush3.xpose.msra.mxu1 %v3312_v45  ;;  %6994 = vmatpush3.xpose.msra.mxu0 %v3310_v42 }
 0x233   :  { %6980 = vmatprep.mubr.msk.f32.mxu1 %vm7386_vm1, %v8450_v62  ;;  %6995 = vmatprep.mubr.msk.f32.mxu0 %vm7386_vm1, %v8450_v62 }
 0x234   :  { %6988 = vmatprep.subr.mxu1 %v8450_v62  ;;  %7003 = vmatprep.subr.mxu0 %v8450_v62 }
 0x235   :  { %6981 = vmatmul.mubr.f32.vlgmr.msra.gmra.mxu1 %v7774_v35  ;;  %6996 = vmatmul.mubr.f32.vlgmr.msra.gmra.mxu0 %v7774_v35 }
 0x236   :  { %6989 = vmatpush3.xpose.msra.mxu1 %v3232_v37  ;;  %6990 = vmatprep.mubr.msk.f32.mxu1 %vm7386_vm1, %v8450_v62 }
 0x237   :  { %6998 = vmatprep.subr.mxu1 %v8450_v62  ;;  %7005 = vmatprep.mubr.msk.f32.mxu0 %vm7386_vm1, %v8450_v62 }
 0x239   :  { %6991 = vmatmul.mubr.f32.vlgmr.msra.gmra.mxu1 %v3269_v38 }
 0x23a   :  { %6999 = vmatpush3.xpose.msra.mxu1 %v3232_v37  ;;  %7000 = vmatprep.mubr.msk.f32.mxu1 %vm7386_vm1, %v8450_v62 }
 0x23b   :  { %7008 = vmatprep.subr.mxu1 %v8450_v62 }
 0x23d   :  { %7001 = vmatmul.mubr.f32.vlgmr.msra.gmra.mxu1 %v7774_v35 }
 0x23e   :  { %7010 = vmatprep.mubr.msk.f32.mxu1 %vm7386_vm1, %v8450_v62 }
 0x2c9   :  { %v1917_v46 = vpop.f32.mrf.mxu0 }
 0x2cb   :  { %v6887_v47 = vpop.f32.mrf.mxu0 }
 0x2cd   :  { %v2067_v48 = vpop.f32.mrf.mxu0 }
 0x2cf   :  { %v6897_v49 = vpop.f32.mrf.mxu0 }
 0x2d1   :  { %v1993_v51 = vpop.f32.mrf.mxu1  ;;  %v2215_v56 = vpop.f32.mrf.mxu0 }
 0x2d2   :  { %v1994_v58 = vadd.f32 %v1993_v51, %v1917_v46 }
 0x2d3   :  { %v6892_v59 = vpop.f32.mrf.mxu1  ;;  %v6907_v61 = vpop.f32.mrf.mxu0 }
 0x2d4   :  { %v2068_v63 = vadd.f32 %v2067_v48, %v1994_v58 }
 0x2d5   :  { %v2141_v0 = vpop.f32.mrf.mxu1  ;;  %v2369_v50 = vpop.f32.mrf.mxu0 }
 0x2d6   :  { %v2142_v1 = vadd.f32 %v2141_v0, %v2068_v63 }
 0x2d7   :  { %v6902_v2 = vpop.f32.mrf.mxu1  ;;  %v6917_v3 = vpop.f32.mrf.mxu0 }
 0x2d8   :  { %v2216_v4 = vadd.f32 %v2215_v56, %v2142_v1 }
 0x2d9   :  { %v2287_v5 = vpop.f32.mrf.mxu1  ;;  %v2519_v6 = vpop.f32.mrf.mxu0 }
 0x2da   :  { %v2288_v7 = vadd.f32 %v2287_v5, %v2216_v4 }
 0x2db   :  { %v6912_v8 = vpop.f32.mrf.mxu1  ;;  %v6927_v9 = vpop.f32.mrf.mxu0 }
 0x2dc   :  { %v3648_v10 = vsel %vm3647_vm3, %v2288_v7, -inf }
 0x2dd   :  { %v2445_v11 = vpop.f32.mrf.mxu1  ;;  %3649 = vmax.xlane.f32.xlu0 %v3648_v10  ;;  %v2667_v12 = vpop.f32.mrf.mxu0 }
 0x2de   :  { %v2446_v13 = vadd.f32 %v2445_v11, %v2369_v50 }
 0x2df   :  { %v6922_v14 = vpop.f32.mrf.mxu1  ;;  %v6937_v15 = vpop.f32.mrf.mxu0 }
 0x2e0   :  { %v2520_v17 = vadd.f32 %v2519_v6, %v2446_v13 }
 0x2e1   :  { %v2593_v18 = vpop.f32.mrf.mxu1  ;;  %v2821_v19 = vpop.f32.mrf.mxu0 }
 0x2e2   :  { %v2594_v20 = vadd.f32 %v2593_v18, %v2520_v17  ;;  %v1606_v18 = vcombine.high %v7605_v23, %v8450_v62 }
 0x2e3   :  { %v6932_v22 = vpop.f32.mrf.mxu1  ;;  %v6947_v24 = vpop.f32.mrf.mxu0 }
 0x2e4   :  { %v2668_v54 = vadd.f32 %v2667_v12, %v2594_v20  ;;  %v1613_v22 = vrot.slane %v7605_v23, %v7612_v57 }
 0x2e5   :  { %v2739_v25 = vpop.f32.mrf.mxu1  ;;  %v2971_v26 = vpop.f32.mrf.mxu0 }
 0x2e6   :  { %v2740_v27 = vadd.f32 %v2739_v25, %v2668_v54 }
 0x2e7   :  { %v6942_v28 = vpop.f32.mrf.mxu1  ;;  %v6957_v29 = vpop.f32.mrf.mxu0 }
 0x2e8   :  { %v3651_v30 = vsel %vm3647_vm3, %v2740_v27, -inf }
 0x2e9   :  { %v2897_v31 = vpop.f32.mrf.mxu1  ;;  %3652 = vmax.xlane.f32.xlu1 %v3651_v30  ;;  %v3119_v32 = vpop.f32.mrf.mxu0 }
 0x2ea   :  { %v2898_v33 = vadd.f32 %v2897_v31, %v2821_v19 }
 0x2eb   :  { %v6952_v34 = vpop.f32.mrf.mxu1  ;;  %v6967_v35 = vpop.f32.mrf.mxu0 }
 0x2ec   :  { %v2972_v52 = vadd.f32 %v2971_v26, %v2898_v33  ;;  %v1620_v26 = vrot.slane %v1606_v18, %v7612_v57  ;;  %v1679_v18 = vrot.slane %v7603_v21, %v7612_v57 }
 0x2ed   :  { %v3045_v53 = vpop.f32.mrf.mxu1  ;;  %v3273_v55 = vpop.f32.mrf.mxu0 }
 0x2ee   :  { %v3046_v16 = vadd.f32 %v3045_v53, %v2972_v52 }
 0x2ef   :  { %v6962_v36 = vpop.f32.mrf.mxu1  ;;  %v6977_v37 = vpop.f32.mrf.mxu0 }
 0x2f0   :  { %v3120_v38 = vadd.f32 %v3119_v32, %v3046_v16 }
 0x2f1   :  { %v3191_v39 = vpop.f32.mrf.mxu1  ;;  %v3423_v40 = vpop.f32.mrf.mxu0 }
 0x2f2   :  { %v3192_v41 = vadd.f32 %v3191_v39, %v3120_v38 }
 0x2f3   :  { %v6972_v42 = vpop.f32.mrf.mxu1  ;;  %v6987_v43 = vpop.f32.mrf.mxu0 }
 0x2f4   :  { %v3654_v44 = vsel %vm3647_vm3, %v3192_v41, -inf }
 0x2f5   :  { %v3349_v45 = vpop.f32.mrf.mxu1  ;;  %3655 = vmax.xlane.f32.xlu0 %v3654_v44  ;;  %v3571_v46 = vpop.f32.mrf.mxu0 }
 0x2f6   :  { %v3350_v47 = vadd.f32 %v3349_v45, %v3273_v55 }
 0x2f7   :  { %v6982_v48 = vpop.f32.mrf.mxu1  ;;  %v6997_v49 = vpop.f32.mrf.mxu0 }
 0x2f8   :  { %v3424_v51 = vadd.f32 %v3423_v40, %v3350_v47 }
 0x2f9   :  { %v3497_v56 = vpop.f32.mrf.mxu1 }
 0x2fa   :  { %v3498_v58 = vadd.f32 %v3497_v56, %v3424_v51 }
 0x2fb   :  { %v6992_v59 = vpop.f32.mrf.mxu1 }
 0x2fc   :  { %v3572_v61 = vadd.f32 %v3571_v46, %v3498_v58 }
 0x2fd   :  { %v3643_v63 = vpop.f32.mrf.mxu1 }
 0x2fe   :  { %v3644_v0 = vadd.f32 %v3643_v63, %v3572_v61 }
 0x2ff   :  { %v7002_v50 = vpop.f32.mrf.mxu1 }
 0x300   :  { %v3657_v1 = vsel %vm3647_vm3, %v3644_v0, -inf }
 0x301   :  { %3658 = vmax.xlane.f32.xlu0 %v3657_v1 }
 0x317   :  { %1600 = vrot.lane.b32.xlu0 %v7605_v23, %s7387_s22 }
 0x366   :  { %v3650_v2 = vpop.xlane.xlu0 %3649 }
 0x367   :  { %v3660_v3 = vsub.f32 %v2288_v7, %v3650_v2 }
 0x369   :  { %v3664_v4 = vmul.f32 1.442695, %v3660_v3 }
 0x36b   :  { %7343 = vpow2.f32 %v3664_v4 }
 0x372   :  { %v3653_v5 = vpop.xlane.xlu1 %3652 }
 0x373   :  { %v3661_v6 = vsub.f32 %v2740_v27, %v3653_v5 }
 0x375   :  { %v3666_v8 = vmul.f32 1.442695, %v3661_v6 }
 0x377   :  { %7345 = vpow2.f32 %v3666_v8 }
 0x378   :  { %v7849_v9 = vpop.eup %7343 }
 0x379   :  { %v3672_v10 = vsel %vm3647_vm3, %v7849_v9, 0.0 }
 0x37a   :  { %3673 = vadd.xlane.f32.xlu1 %v3672_v10 }
 0x37e   :  { %v3656_v11 = vpop.xlane.xlu0 %3655 }
 0x37f   :  { %v3662_v12 = vsub.f32 %v3192_v41, %v3656_v11 }
 0x381   :  { %v3668_v13 = vmul.f32 1.442695, %v3662_v12  ;;  %v1672_v12 = vcombine.high %v7603_v21, %v8450_v62 }
 0x383   :  { %7347 = vpow2.f32 %v3668_v13 }
 0x384   :  { %v7853_v14 = vpop.eup %7345 }
 0x385   :  { %v3675_v7 = vsel %vm3647_vm3, %v7853_v14, 0.0 }
 0x386   :  { %3676 = vadd.xlane.f32.xlu1 %v3675_v7 }
 0x38a   :  { %v3659_v15 = vpop.xlane.xlu0 %3658 }
 0x38b   :  { %v3663_v17 = vsub.f32 %v3644_v0, %v3659_v15 }
 0x38d   :  { %v3670_v19 = vmul.f32 1.442695, %v3663_v17 }
 0x38e   :  { %v1601_v20 = vpop.permute.xlu0 %1600 }
 0x38f   :  { %7349 = vpow2.f32 %v3670_v19  ;;  %v1621_v24 = vcombine.high %v1601_v20, %v8450_v62  ;;  %v1628_v54 = vrot.slane %v1601_v20, %v7612_v57 }
 0x390   :  { %v7863_v25 = vpop.eup %7347 }
 0x391   :  { %v1635_v27 = vrot.slane %v1621_v24, %v7612_v57  ;;  %v1636_v28 = vcombine.low %v1613_v22, %v1628_v54  ;;  %v1637_v29 = vcombine.high %v1613_v22, %v1628_v54  ;;  %v3678_v30 = vsel %vm3647_vm3, %v7863_v25, 0.0 }
 0x392   :  { %3679 = vadd.xlane.f32.xlu1 %v3678_v30  ;;  %v1686_v24 = vrot.slane %v1672_v12, %v7612_v57 }
 0x393   :  { %v1644_v31 = vrot.slane %v1636_v28, %v7615_v60  ;;  %v1651_v23 = vrot.slane %v1637_v29, %v7615_v60  ;;  %v1652_v32 = vcombine.low %v1620_v26, %v1635_v27  ;;  %v1653_v33 = vcombine.high %v1620_v26, %v1635_v27 }
 0x395   :  { %v1660_v34 = vrot.slane %v1652_v32, %v7615_v60  ;;  %v1667_v35 = vrot.slane %v1653_v33, %v7615_v60  ;;  %v1738_v52 = vcombine.low %v1644_v31, %v1651_v23  ;;  %v6466_v53 = vcombine.high %v1644_v31, %v1651_v23 }
 0x397   :  { %v1745_v55 = vrot.slane %v1738_v52, %v7612_v57  ;;  %v1753_v16 = vrot.slane %v6466_v53, %v7612_v57  ;;  %v1754_v36 = vcombine.low %v1660_v34, %v1667_v35  ;;  %v6467_v37 = vcombine.high %v1660_v34, %v1667_v35 }
 0x399   :  { %v1761_v38 = vrot.slane %v1754_v36, %v7612_v57  ;;  %v1769_v39 = vrot.slane %v6467_v37, %v7612_v57  ;;  %v1770_v40 = vcombine.low %v1745_v55, %v1753_v16 }
 0x39b   :  { %v1778_v41 = vcombine.low %v1761_v38, %v1769_v39  ;;  %v1777_v44 = vrot.slane %v1770_v40, %v7615_v60 }
 0x39c   :  { %v7877_v42 = vpop.eup %7349 }
 0x39d   :  { %v3681_v43 = vsel %vm3647_vm3, %v7877_v42, 0.0  ;;  %v1785_v45 = vrot.slane %v1778_v41, %v7615_v60 }
 0x39e   :  { %3682 = vadd.xlane.f32.xlu0 %v3681_v43 }
 0x39f   :  { %v1786_v46 = vcombine.low %v1777_v44, %v1785_v45  ;;  %v1787_v47 = vcombine.high %v1777_v44, %v1785_v45 }
 0x3a1   :  { %v3726_v48 = vand.u32 4294901760, %v1786_v46  ;;  %v7887_v61 = vand.u32 4294901760, %v1787_v47 }
 0x3a3   :  { %1602 = vrot.lane.b32.xlu1 %v7603_v21, %s7387_s22  ;;  %7004 = vmatpush3.msra.mxu0 %v3726_v48  ;;  %v3803_v49 = vsub.f32 %v1786_v46, %v3726_v48  ;;  %v7891_v1 = vsub.f32 %v1787_v47, %v7887_v61 }
 0x3a4   :  { %7013 = vmatprep.subr.mxu0 %v8450_v62 }
 0x3a5   :  { %v3804_v51 = vand.u32 4294901760, %v3803_v49  ;;  %v4253_v4 = vand.u32 4294901760, %v7891_v1 }
 0x3a7   :  { %v3805_v56 = vsub.f32 %v3803_v49, %v3804_v51  ;;  %v4254_v8 = vsub.f32 %v7891_v1, %v4253_v4 }
 0x3a9   :  { %v3806_v58 = vand.u32 4294901760, %v3805_v56  ;;  %v4255_v7 = vand.u32 4294901760, %v4254_v8 }
 0x3ab   :  { %7009 = vmatpush3.msra.mxu1 %v3806_v58 }
 0x3ac   :  { %7018 = vmatprep.subr.mxu1 %v8450_v62 }
 0x403   :  { %v3674_v59 = vpop.xlane.xlu1 %3673 }
 0x404   :  { %7351 = vrcp.f32 %v3674_v59 }
 0x40f   :  { %v3677_v63 = vpop.xlane.xlu1 %3676 }
 0x410   :  { %7353 = vrcp.f32 %v3677_v63 }
 0x411   :  { %v7352_v0 = vpop.eup %7351 }
 0x412   :  { %v3685_v50 = vmul.f32 %v7352_v0, %v7849_v9 }
 0x414   :  { %v3693_v2 = vsel %vm3647_vm3, %v3685_v50, 0 }
 0x415   :  { %v7894_v3 = vand.u32 4294901760, %v3693_v2 }
 0x417   :  { %v3762_v5 = vsub.f32 %v3693_v2, %v7894_v3  ;;  %7011 = vmatmul.mubr.f32.vlgmr.msra.gmra.mxu1 %v7894_v3 }
 0x418   :  { %7019 = vmatpush3.msra.mxu1 %v3726_v48  ;;  %7020 = vmatprep.mubr.msk.f32.mxu1 %vm7386_vm1, %v8450_v62 }
 0x419   :  { %7028 = vmatprep.subr.mxu1 %v8450_v62  ;;  %v3763_v6 = vand.u32 4294901760, %v3762_v5 }
 0x41b   :  { %v3680_v9 = vpop.xlane.xlu1 %3679  ;;  %7021 = vmatmul.mubr.f32.vlgmr.msra.gmra.mxu1 %v3763_v6  ;;  %v3764_v10 = vsub.f32 %v3762_v5, %v3763_v6 }
 0x41c   :  { %7355 = vrcp.f32 %v3680_v9  ;;  %7029 = vmatpush3.msra.mxu1 %v3726_v48  ;;  %7030 = vmatprep.mubr.msk.f32.mxu1 %vm7386_vm1, %v8450_v62 }
 0x41d   :  { %v7354_v11 = vpop.eup %7353  ;;  %7038 = vmatprep.subr.mxu1 %v8450_v62  ;;  %v3765_v13 = vand.u32 4294901760, %v3764_v10 }
 0x41e   :  { %v3687_v15 = vmul.f32 %v7354_v11, %v7853_v14 }
 0x41f   :  { %v1603_v17 = vpop.permute.xlu1 %1602  ;;  %7006 = vmatmul.mubr.f32.vlgmr.msra.gmra.mxu0 %v3765_v13  ;;  %7031 = vmatmul.mubr.f32.vlgmr.msra.gmra.mxu1 %v7894_v3 }
 0x420   :  { %v1687_v19 = vcombine.high %v1603_v17, %v8450_v62  ;;  %v1694_v20 = vrot.slane %v1603_v17, %v7612_v57  ;;  %7014 = vmatpush3.msra.mxu0 %v3803_v49  ;;  %7039 = vmatpush3.msra.mxu1 %v4255_v7  ;;  %v4142_v22 = vsel %vm3647_vm3, %v3687_v15, 0  ;;  %v5746_v17 = vld [vmem:[%s8447_s5 + $0x78] sm:$0xff] }
 0x421   :  { %7015 = vmatprep.mubr.msk.f32.mxu0 %vm7386_vm1, %v8450_v62  ;;  %7023 = vmatprep.subr.mxu0 %v8450_v62  ;;  %v7921_v14 = vand.u32 4294901760, %v4142_v22 }
 0x422   :  { %v1701_v54 = vrot.slane %v1687_v19, %v7612_v57  ;;  %v1702_v21 = vcombine.low %v1679_v18, %v1694_v20  ;;  %v1703_v26 = vcombine.high %v1679_v18, %v1694_v20  ;;  %7040 = vmatprep.mubr.msk.f32.mxu1 %vm7386_vm1, %v8450_v62  ;;  %7048 = vmatprep.subr.mxu1 %v8450_v62  ;;  %v8007_v18 = vand.u32 4294901760, %v5746_v17 }
 0x423   :  { %7016 = vmatmul.mubr.f32.vlgmr.msra.gmra.mxu0 %v3762_v5  ;;  %v4211_v27 = vsub.f32 %v4142_v22, %v7921_v14  ;;  %7041 = vmatmul.mubr.f32.vlgmr.msra.gmra.mxu1 %v7921_v14 }
 0x424   :  { %v1710_v28 = vrot.slane %v1702_v21, %v7615_v60  ;;  %v1717_v29 = vrot.slane %v1703_v26, %v7615_v60  ;;  %v1718_v30 = vcombine.low %v1686_v24, %v1701_v54  ;;  %v1719_v31 = vcombine.high %v1686_v24, %v1701_v54  ;;  %7024 = vmatpush3.msra.mxu0 %v3804_v51 }
 0x425   :  { %7049 = vmatpush3.msra.mxu1 %v7887_v61  ;;  %7025 = vmatprep.mubr.msk.f32.mxu0 %vm7386_vm1, %v8450_v62  ;;  %v4212_v23 = vand.u32 4294901760, %v4211_v27  ;;  %v8010_v19 = vsub.f32 %v5746_v17, %v8007_v18 }
 0x426   :  { %v1726_v32 = vrot.slane %v1718_v30, %v7615_v60  ;;  %v1733_v33 = vrot.slane %v1719_v31, %v7615_v60  ;;  %v1788_v34 = vcombine.low %v1710_v28, %v1717_v29  ;;  %v6468_v35 = vcombine.high %v1710_v28, %v1717_v29  ;;  %7033 = vmatprep.subr.mxu0 %v8450_v62 }
 0x427   :  { %7050 = vmatprep.mubr.msk.f32.mxu1 %vm7386_vm1, %v8450_v62  ;;  %7058 = vmatprep.subr.mxu1 %v8450_v62  ;;  %v3683_v52 = vpop.xlane.xlu0 %3682  ;;  %v4213_v53 = vsub.f32 %v4211_v27, %v4212_v23  ;;  %v8015_v20 = vand.u32 4294901760, %v8010_v19 }
 0x428   :  { %v1795_v55 = vrot.slane %v1788_v34, %v7612_v57  ;;  %v1803_v16 = vrot.slane %v6468_v35, %v7612_v57  ;;  %v1804_v36 = vcombine.low %v1726_v32, %v1733_v33  ;;  %v6469_v37 = vcombine.high %v1726_v32, %v1733_v33  ;;  %7026 = vmatmul.mubr.f32.vlgmr.msra.gmra.mxu0 %v7894_v3 }
 0x429   :  { %v7356_v38 = vpop.eup %7355  ;;  %7357 = vrcp.f32 %v3683_v52  ;;  %7034 = vmatpush3.msra.mxu0 %v7887_v61  ;;  %7051 = vmatmul.mubr.f32.vlgmr.msra.gmra.mxu1 %v4212_v23  ;;  %v4214_v39 = vand.u32 4294901760, %v4213_v53  ;;  %v5859_v22 = vsub.f32 %v8010_v19, %v8015_v20 }
 0x42a   :  { %v3689_v40 = vmul.f32 %v7356_v38, %v7863_v25  ;;  %v1811_v41 = vrot.slane %v1804_v36, %v7612_v57  ;;  %v1819_v43 = vrot.slane %v6469_v37, %v7612_v57  ;;  %v1820_v44 = vcombine.low %v1795_v55, %v1803_v16  ;;  %7059 = vmatpush3.msra.mxu1 %v7887_v61 }
 0x42b   :  { %7035 = vmatprep.mubr.msk.f32.mxu0 %vm7386_vm1, %v8450_v62  ;;  %7043 = vmatprep.subr.mxu0 %v8450_v62  ;;  %v5860_v24 = vand.u32 4294901760, %v5859_v22 }
 0x42c   :  { %7060 = vmatprep.mubr.msk.f32.mxu1 %vm7386_vm1, %v8450_v62  ;;  %7036 = vmatmul.mubr.f32.vlgmr.msra.gmra.mxu0 %v4214_v39  ;;  %v1828_v45 = vcombine.low %v1811_v41, %v1819_v43  ;;  %v4591_v46 = vsel %vm3647_vm3, %v3689_v40, 0  ;;  %v1827_v47 = vrot.slane %v1820_v44, %v7615_v60 }
 0x42d   :  { %7044 = vmatpush3.msra.mxu0 %v7891_v1  ;;  %7061 = vmatmul.mubr.f32.vlgmr.msra.gmra.mxu1 %v7921_v14  ;;  %v4659_v25 = vand.u32 4294901760, %v4591_v46 }
 0x42e   :  { %7045 = vmatprep.mubr.msk.f32.mxu0 %vm7386_vm1, %v8450_v62  ;;  %7053 = vmatprep.subr.mxu0 %v8450_v62  ;;  %v1835_v48 = vrot.slane %v1828_v45, %v7615_v60 }
 0x42f   :  { %v4660_v49 = vsub.f32 %v4591_v46, %v4659_v25  ;;  %7068 = vmatprep.subr.mxu1 %v8450_v62  ;;  %7070 = vmatprep.mubr.msk.f32.mxu1 %vm7386_vm1, %v8450_v62 }
 0x430   :  { %7046 = vmatmul.mubr.f32.vlgmr.msra.gmra.mxu0 %v4211_v27  ;;  %v1836_v51 = vcombine.low %v1827_v47, %v1835_v48  ;;  %v1837_v58 = vcombine.high %v1827_v47, %v1835_v48 }
 0x431   :  { %7054 = vmatpush3.msra.mxu0 %v4253_v4  ;;  %7055 = vmatprep.mubr.msk.f32.mxu0 %vm7386_vm1, %v8450_v62  ;;  %v4661_v56 = vand.u32 4294901760, %v4660_v49 }
 0x432   :  { %7063 = vmatprep.subr.mxu0 %v8450_v62  ;;  %v4624_v59 = vand.u32 4294901760, %v1836_v51  ;;  %v5073_v50 = vand.u32 4294901760, %v1837_v58 }
 0x433   :  { %v4662_v61 = vsub.f32 %v4660_v49, %v4661_v56 }
 0x434   :  { %7056 = vmatmul.mubr.f32.vlgmr.msra.gmra.mxu0 %v7921_v14  ;;  %v4701_v63 = vsub.f32 %v1836_v51, %v4624_v59  ;;  %v5150_v6 = vsub.f32 %v1837_v58, %v5073_v50  ;;  %v5745_v58 = vld [vmem:[%s8447_s5 + $0x70] sm:$0xff] }
 0x435   :  { %7064 = vmatpush3.msra.mxu0 %v4624_v59  ;;  %7065 = vmatprep.mubr.msk.f32.mxu0 %vm7386_vm1, %v8450_v62  ;;  %v4663_v0 = vand.u32 4294901760, %v4662_v61  ;;  %v8023_v61 = vand.u32 4294901760, %v5745_v58 }
 0x436   :  { %v7358_v1 = vpop.eup %7357  ;;  %7073 = vmatprep.subr.mxu0 %v8450_v62  ;;  %v4702_v2 = vand.u32 4294901760, %v4701_v63  ;;  %v5151_v11 = vand.u32 4294901760, %v5150_v6 }
 0x437   :  { %v3691_v3 = vmul.f32 %v7358_v1, %v7877_v42 }
 0x438   :  { %7066 = vmatmul.mubr.f32.vlgmr.msra.gmra.mxu0 %v4663_v0  ;;  %v4703_v4 = vsub.f32 %v4701_v63, %v4702_v2  ;;  %v5152_v13 = vsub.f32 %v5150_v6, %v5151_v11 }
 0x439   :  { %7074 = vmatpush3.msra.mxu0 %v4701_v63  ;;  %7075 = vmatprep.mubr.msk.f32.mxu0 %vm7386_vm1, %v8450_v62  ;;  %v5040_v5 = vsel %vm3647_vm3, %v3691_v3, 0  ;;  %v8032_v3 = vsub.f32 %v5745_v58, %v8023_v61 }
 0x43a   :  { %7083 = vmatprep.subr.mxu0 %v8450_v62  ;;  %v4704_v8 = vand.u32 4294901760, %v4703_v4  ;;  %v5108_v9 = vand.u32 4294901760, %v5040_v5  ;;  %v5153_v15 = vand.u32 4294901760, %v5152_v13 }
 0x43c   :  { %7076 = vmatmul.mubr.f32.vlgmr.msra.gmra.mxu0 %v4660_v49  ;;  %7069 = vmatpush3.msra.mxu1 %v4704_v8  ;;  %v5109_v10 = vsub.f32 %v5040_v5, %v5108_v9  ;;  %v5743_v8 = vld [vmem:[%s8447_s5 + $0x60] sm:$0xff] }
 0x43d   :  { %7084 = vmatpush3.msra.mxu0 %v4702_v2  ;;  %7071 = vmatmul.mubr.f32.vlgmr.msra.gmra.mxu1 %v4659_v25 }
 0x43e   :  { %7078 = vmatprep.subr.mxu1 %v8450_v62  ;;  %7085 = vmatprep.mubr.msk.f32.mxu0 %vm7386_vm1, %v8450_v62  ;;  %v5110_v42 = vand.u32 4294901760, %v5109_v10 }
 0x43f   :  { %7079 = vmatpush3.msra.mxu1 %v4624_v59  ;;  %7093 = vmatprep.subr.mxu0 %v8450_v62 }
 0x440   :  { %7086 = vmatmul.mubr.f32.vlgmr.msra.gmra.mxu0 %v4659_v25  ;;  %7080 = vmatprep.mubr.msk.f32.mxu1 %vm7386_vm1, %v8450_v62  ;;  %v5111_v12 = vsub.f32 %v5109_v10, %v5110_v42 }
 0x441   :  { %7094 = vmatpush3.msra.mxu0 %v5073_v50  ;;  %7088 = vmatprep.subr.mxu1 %v8450_v62 }
 0x442   :  { %7081 = vmatmul.mubr.f32.vlgmr.msra.gmra.mxu1 %v4661_v56  ;;  %7095 = vmatprep.mubr.msk.f32.mxu0 %vm7386_vm1, %v8450_v62  ;;  %v5112_v7 = vand.u32 4294901760, %v5111_v12 }
 0x443   :  { %7089 = vmatpush3.msra.mxu1 %v4624_v59  ;;  %7103 = vmatprep.subr.mxu0 %v8450_v62 }
 0x444   :  { %7096 = vmatmul.mubr.f32.vlgmr.msra.gmra.mxu0 %v5112_v7  ;;  %7090 = vmatprep.mubr.msk.f32.mxu1 %vm7386_vm1, %v8450_v62  ;;  %v8050_v7 = vand.u32 4294901760, %v5743_v8 }
 0x445   :  { %7104 = vmatpush3.msra.mxu0 %v5150_v6  ;;  %7098 = vmatprep.subr.mxu1 %v8450_v62 }
 0x446   :  { %7091 = vmatmul.mubr.f32.vlgmr.msra.gmra.mxu1 %v4659_v25  ;;  %7105 = vmatprep.mubr.msk.f32.mxu0 %vm7386_vm1, %v8450_v62 }
 0x447   :  { %7099 = vmatpush3.msra.mxu1 %v5153_v15  ;;  %7113 = vmatprep.subr.mxu0 %v8450_v62 }
 0x448   :  { %7106 = vmatmul.mubr.f32.vlgmr.msra.gmra.mxu0 %v5109_v10  ;;  %7100 = vmatprep.mubr.msk.f32.mxu1 %vm7386_vm1, %v8450_v62 }
 0x449   :  { %7114 = vmatpush3.msra.mxu0 %v5151_v11  ;;  %7108 = vmatprep.subr.mxu1 %v8450_v62 }
 0x44a   :  { %7101 = vmatmul.mubr.f32.vlgmr.msra.gmra.mxu1 %v5108_v9  ;;  %7115 = vmatprep.mubr.msk.f32.mxu0 %vm7386_vm1, %v8450_v62 }
 0x44b   :  { %7109 = vmatpush3.msra.mxu1 %v5073_v50  ;;  %7110 = vmatprep.mubr.msk.f32.mxu1 %vm7386_vm1, %v8450_v62 }
 0x44c   :  { %7116 = vmatmul.mubr.f32.vlgmr.msra.gmra.mxu0 %v5108_v9  ;;  %7118 = vmatprep.subr.mxu1 %v8450_v62 }
 0x44d   :  { %7123 = vmatprep.subr.mxu0 %v8007_v18 }
 0x44e   :  { %7111 = vmatmul.mubr.f32.vlgmr.msra.gmra.mxu1 %v5110_v42  ;;  %7124 = vmatpush3.msra.mxu0 %v8007_v18  ;;  %v8044_v42 = vand.u32 4294901760, %v8032_v3 }
 0x44f   :  { %7119 = vmatpush3.msra.mxu1 %v5073_v50  ;;  %7120 = vmatprep.mubr.msk.f32.mxu1 %vm7386_vm1, %v8450_v62  ;;  %v5744_v50 = vld [vmem:[%s8447_s5 + $0x68] sm:$0xff] }
 0x450   :  { %7158 = vmatprep.subr.mxu1 %v5860_v24  ;;  %v8034_v4 = vand.u32 4294901760, %v5744_v50  ;;  %7125 = vmatprep.subr.mxu0 %v8023_v61 }
 0x451   :  { %7126 = vmatpush3.msra.mxu0 %v8023_v61 }
 0x452   :  { %7121 = vmatmul.mubr.f32.vlgmr.msra.gmra.mxu1 %v5108_v9  ;;  %7127 = vmatprep.subr.mxu0 %v8034_v4  ;;  %v8048_v13 = vsub.f32 %v5744_v50, %v8034_v4 }
 0x453   :  { %7159 = vmatpush3.msra.mxu1 %v5860_v24  ;;  %7128 = vmatpush3.msra.mxu0 %v8034_v4 }
 0x454   :  { %7129 = vmatprep.subr.mxu0 %v8050_v7 }
 0x455   :  { %7130 = vmatpush3.msra.mxu0 %v8050_v7 }
 0x4d7   :  { %v3843_v14 = vpop.f32.mrf.mxu1 }
 0x4d9   :  { %v7012_v54 = vpop.f32.mrf.mxu1 }
 0x4db   :  { %v3991_v21 = vpop.f32.mrf.mxu1 }
 0x4dd   :  { %v7022_v26 = vpop.f32.mrf.mxu1 }
 0x4de   :  { %v5866_v26 = vsub.f32 %v8032_v3, %v8044_v42 }
 0x4df   :  { %v3767_v27 = vpop.f32.mrf.mxu0  ;;  %v4137_v28 = vpop.f32.mrf.mxu1 }
 0x4e0   :  { %v3844_v32 = vadd.f32 %v3843_v14, %v3767_v27  ;;  %v8058_v27 = vand.u32 4294901760, %v8048_v13 }
 0x4e1   :  { %v7007_v29 = vpop.f32.mrf.mxu0  ;;  %v7032_v30 = vpop.f32.mrf.mxu1 }
 0x4e3   :  { %v3917_v31 = vpop.f32.mrf.mxu0  ;;  %v4292_v23 = vpop.f32.mrf.mxu1 }
 0x4e4   :  { %v3918_v35 = vadd.f32 %v3917_v31, %v3844_v32 }
 0x4e5   :  { %v7017_v33 = vpop.f32.mrf.mxu0  ;;  %v7042_v34 = vpop.f32.mrf.mxu1 }
 0x4e6   :  { %v3992_v55 = vadd.f32 %v3991_v21, %v3918_v35  ;;  %v5742_v33 = vld [vmem:[%s8447_s5 + $0x58] sm:$0xff]  ;;  %v5741_v34 = vld [vmem:[%s8447_s5 + $0x50] sm:$0xff] }
 0x4e8   :  { %v4065_v52 = vpop.f32.mrf.mxu0 }
 0x4e9   :  { %v4440_v53 = vpop.f32.mrf.mxu1  ;;  %v4066_v39 = vadd.f32 %v4065_v52, %v3992_v55  ;;  %v5873_v55 = vsub.f32 %v8048_v13, %v8058_v27 }
 0x4ea   :  { %v7027_v16 = vpop.f32.mrf.mxu0 }
 0x4eb   :  { %v7052_v36 = vpop.f32.mrf.mxu1  ;;  %v4138_v46 = vadd.f32 %v4137_v28, %v4066_v39  ;;  %v8061_v28 = vsub.f32 %v5743_v8, %v8050_v7 }
 0x4ec   :  { %v4216_v37 = vpop.f32.mrf.mxu0 }
 0x4ed   :  { %v4586_v38 = vpop.f32.mrf.mxu1  ;;  %v4293_v41 = vadd.f32 %v4292_v23, %v4216_v37  ;;  %v5488_v51 = vcombine.high %v4138_v46, %v8450_v62  ;;  %v5495_v63 = vrot.slane %v4138_v46, %v7612_v57  ;;  %v8076_v16 = vand.u32 4294901760, %v8061_v28 }
 0x4ee   :  { %v7037_v40 = vpop.f32.mrf.mxu0  ;;  %v8085_v46 = vand.u32 4294901760, %v5742_v33 }
 0x4ef   :  { %v7062_v43 = vpop.f32.mrf.mxu1  ;;  %v5502_v5 = vrot.slane %v5488_v51, %v7612_v57  ;;  %v5740_v40 = vld [vmem:[%s8447_s5 + $0x48] sm:$0xff] }
 0x4f0   :  { %v4366_v44 = vpop.f32.mrf.mxu0  ;;  %7131 = vmatprep.subr.mxu0 %v8085_v46 }
 0x4f1   :  { %v4367_v45 = vadd.f32 %v4366_v44, %v4293_v41  ;;  %v5874_v44 = vand.u32 4294901760, %v5873_v55  ;;  %7132 = vmatpush3.msra.mxu0 %v8085_v46 }
 0x4f2   :  { %v7047_v25 = vpop.f32.mrf.mxu0 }
 0x4f3   :  { %v4441_v47 = vadd.f32 %v4440_v53, %v4367_v45  ;;  %v5867_v53 = vand.u32 4294901760, %v5866_v26  ;;  %v5880_v45 = vsub.f32 %v8061_v28, %v8076_v16  ;;  %v8087_v25 = vand.u32 4294901760, %v5741_v34 }
 0x4f4   :  { %v4514_v48 = vpop.f32.mrf.mxu0 }
 0x4f5   :  { %v4515_v49 = vadd.f32 %v4514_v48, %v4441_v47  ;;  %7160 = vmatprep.subr.mxu1 %v5867_v53  ;;  %v5739_v47 = vld [vmem:[%s8447_s5 + $0x40] sm:$0xff]  ;;  %v8098_v50 = vsub.f32 %v5741_v34, %v8087_v25  ;;  %7133 = vmatprep.subr.mxu0 %v8087_v25 }
 0x4f6   :  { %v7057_v56 = vpop.f32.mrf.mxu0  ;;  %7161 = vmatpush3.msra.mxu1 %v5867_v53  ;;  %v8106_v8 = vand.u32 4294901760, %v5739_v47  ;;  %7134 = vmatpush3.msra.mxu0 %v8087_v25 }
 0x4f7   :  { %v4587_v59 = vadd.f32 %v4586_v38, %v4515_v49  ;;  %7162 = vmatprep.subr.mxu1 %v5874_v44 }
 0x4f8   :  { %v4665_v0 = vpop.f32.mrf.mxu0  ;;  %7163 = vmatpush3.msra.mxu1 %v5874_v44 }
 0x4f9   :  { %v5503_v1 = vcombine.high %v4587_v59, %v8450_v62  ;;  %v5510_v2 = vrot.slane %v4587_v59, %v7612_v57 }
 0x4fa   :  { %v7067_v6 = vpop.f32.mrf.mxu0 }
 0x4fb   :  { %v5517_v9 = vrot.slane %v5503_v1, %v7612_v57  ;;  %v5518_v10 = vcombine.low %v5495_v63, %v5510_v2  ;;  %v5519_v11 = vcombine.high %v5495_v63, %v5510_v2  ;;  %v5881_v63 = vand.u32 4294901760, %v5880_v45  ;;  %v5738_v2 = vld [vmem:[%s8447_s5 + $0x38] sm:$0xff] }
 0x4fc   :  { %v4815_v12 = vpop.f32.mrf.mxu0  ;;  %v8100_v1 = vand.u32 4294901760, %v5740_v40 }
 0x4fd   :  { %v5526_v15 = vrot.slane %v5518_v10, %v7615_v60  ;;  %v5533_v17 = vrot.slane %v5519_v11, %v7615_v60  ;;  %v5534_v22 = vcombine.low %v5502_v5, %v5517_v9  ;;  %v5535_v24 = vcombine.high %v5502_v5, %v5517_v9  ;;  %v4741_v14 = vpop.f32.mrf.mxu1  ;;  %7164 = vmatprep.subr.mxu1 %v5881_v63 }
 0x4fe   :  { %v4742_v54 = vadd.f32 %v4741_v14, %v4665_v0  ;;  %v7077_v21 = vpop.f32.mrf.mxu0  ;;  %v8095_v0 = vsub.f32 %v5742_v33, %v8085_v46  ;;  %7165 = vmatpush3.msra.mxu1 %v5881_v63  ;;  %7135 = vmatprep.subr.mxu0 %v8100_v1 }
 0x4ff   :  { %v5542_v29 = vrot.slane %v5534_v22, %v7615_v60  ;;  %v5549_v30 = vrot.slane %v5535_v24, %v7615_v60  ;;  %v5620_v31 = vcombine.low %v5526_v15, %v5533_v17  ;;  %v6470_v23 = vcombine.high %v5526_v15, %v5533_v17  ;;  %v7072_v32 = vpop.f32.mrf.mxu1  ;;  %v5737_v22 = vld [vmem:[%s8447_s5 + $0x30] sm:$0xff]  ;;  %7136 = vmatpush3.msra.mxu0 %v8100_v1 }
 0x500   :  { %v4963_v35 = vpop.f32.mrf.mxu0  ;;  %v4816_v52 = vadd.f32 %v4815_v12, %v4742_v54  ;;  %v8110_v11 = vand.u32 4294901760, %v8095_v0  ;;  %v8113_v12 = vand.u32 4294901760, %v8098_v50  ;;  %v8116_v15 = vsub.f32 %v5740_v40, %v8100_v1  ;;  %7137 = vmatprep.subr.mxu0 %v8106_v8  ;;  %v5734_v40 = vld [vmem:[%s8447_s5 + $0x18] sm:$0xff] }
 0x501   :  { %v5627_v36 = vrot.slane %v5620_v31, %v7612_v57  ;;  %v5635_v37 = vrot.slane %v6470_v23, %v7612_v57  ;;  %v5636_v38 = vcombine.low %v5542_v29, %v5549_v30  ;;  %v6471_v39 = vcombine.high %v5542_v29, %v5549_v30  ;;  %7138 = vmatpush3.msra.mxu0 %v8106_v8 }
 0x502   :  { %v4889_v41 = vpop.f32.mrf.mxu1  ;;  %v7087_v43 = vpop.f32.mrf.mxu0  ;;  %v8118_v17 = vand.u32 4294901760, %v5738_v2  ;;  %v8131_v54 = vsub.f32 %v5739_v47, %v8106_v8  ;;  %v8133_v21 = vand.u32 4294901760, %v5737_v22  ;;  %v5887_v30 = vsub.f32 %v8095_v0, %v8110_v11  ;;  %v5733_v47 = vld [vmem:[%s8447_s5 + $0x10] sm:$0xff] }
 0x503   :  { %v4890_v48 = vadd.f32 %v4889_v41, %v4816_v52  ;;  %v5643_v49 = vrot.slane %v5636_v38, %v7612_v57  ;;  %v5651_v51 = vrot.slane %v6471_v39, %v7612_v57  ;;  %v5652_v56 = vcombine.low %v5627_v36, %v5635_v37  ;;  %v5735_v52 = vld [vmem:[%s8447_s5 + $0x20] sm:$0xff] }
 0x504   :  { %v7082_v58 = vpop.f32.mrf.mxu1  ;;  %v5114_v59 = vpop.f32.mrf.mxu0  ;;  %v5894_v31 = vsub.f32 %v8098_v50, %v8113_v12  ;;  %v8141_v23 = vand.u32 4294901760, %v8116_v15  ;;  %v8144_v32 = vsub.f32 %v5738_v2, %v8118_v17  ;;  %v5888_v36 = vand.u32 4294901760, %v5887_v30  ;;  %7139 = vmatprep.subr.mxu0 %v8118_v17 }
 0x505   :  { %v4964_v5 = vadd.f32 %v4963_v35, %v4890_v48  ;;  %v5660_v6 = vcombine.low %v5643_v49, %v5651_v51  ;;  %v8125_v24 = vrot.slane %v5652_v56, %v7615_v60  ;;  %v5736_v35 = vld [vmem:[%s8447_s5 + $0x28] sm:$0xff]  ;;  %v8161_v39 = vand.u32 4294901760, %v8131_v54  ;;  %7140 = vmatpush3.msra.mxu0 %v8118_v17 }
 0x506   :  { %v5035_v9 = vpop.f32.mrf.mxu1  ;;  %v7097_v10 = vpop.f32.mrf.mxu0  ;;  %v5895_v37 = vand.u32 4294901760, %v5894_v31  ;;  %v5901_v38 = vsub.f32 %v8116_v15, %v8141_v23  ;;  %v8169_v44 = vand.u32 4294901760, %v8144_v32  ;;  %v8172_v45 = vsub.f32 %v5737_v22, %v8133_v21  ;;  %7166 = vmatprep.subr.mxu1 %v5888_v36  ;;  %7141 = vmatprep.subr.mxu0 %v8133_v21 }
 0x507   :  { %v8128_v14 = vrot.slane %v5660_v6, %v7615_v60  ;;  %v5036_v41 = vadd.f32 %v5035_v9, %v4964_v5  ;;  %v5908_v56 = vsub.f32 %v8131_v54, %v8161_v39  ;;  %v8180_v58 = vand.u32 4294901760, %v5736_v35  ;;  %7167 = vmatpush3.msra.mxu1 %v5888_v36  ;;  %v5732_v9 = vld [vmem:[%s8447_s5 + $0x8] sm:$0xff]  ;;  %7142 = vmatpush3.msra.mxu0 %v8133_v21 }
 0x508   :  { %v7092_v26 = vpop.f32.mrf.mxu1  ;;  %v5264_v29 = vpop.f32.mrf.mxu0  ;;  %8465 = vst [vmem:[#allocation5_spill] sm:$0xff] %v8169_v44  ;;  %v5902_v51 = vand.u32 4294901760, %v5901_v38  ;;  %v5915_v2 = vsub.f32 %v8144_v32, %v8169_v44  ;;  %v8188_v5 = vand.u32 4294901760, %v8172_v45  ;;  %v8190_v6 = vand.u32 4294901760, %v5734_v40  ;;  %7168 = vmatprep.subr.mxu1 %v5895_v37 }
 0x509   :  { %v5669_v33 = vcombine.high %v8125_v24, %v8128_v14  ;;  %v5909_v26 = vand.u32 4294901760, %v5908_v56  ;;  %v8203_v31 = vand.u32 4294901760, %v5733_v47  ;;  %7169 = vmatpush3.msra.mxu1 %v5895_v37  ;;  %7143 = vmatprep.subr.mxu0 %v8180_v58  ;;  %v8221_v37 = vand.u32 4294901760, %v5732_v9 }
 0x50a   :  { %v5190_v53 = vpop.f32.mrf.mxu1  ;;  %v7107_v55 = vpop.f32.mrf.mxu0  ;;  %8466 = vst [vmem:[#allocation6_spill] sm:$0xff] %v8188_v5  ;;  %v8208_v36 = vsub.f32 %v5734_v40, %v8190_v6  ;;  %7170 = vmatprep.subr.mxu1 %v5902_v51  ;;  %v5554_v40 = vcombine.high %v5036_v41, %v8450_v62  ;;  %7144 = vmatpush3.msra.mxu0 %v8180_v58 }
 0x50b   :  { %v5191_v43 = vadd.f32 %v5190_v53, %v5114_v59  ;;  %5722 = vrot.lane.b32.xlu1 %v5669_v33, %s7387_s22  ;;  %v8182_v59 = vand.u32 4294901760, %v5735_v52  ;;  %v5916_v53 = vand.u32 4294901760, %v5915_v2  ;;  %v5922_v55 = vsub.f32 %v8172_v45, %v8188_v5  ;;  %7171 = vmatpush3.msra.mxu1 %v5902_v51  ;;  %v5731_v51 = vld [vmem:[%s8447_s5] sm:$0xff] }
 0x50c   :  { %v7102_v48 = vpop.f32.mrf.mxu1  ;;  %v5412_v49 = vpop.f32.mrf.mxu0  ;;  %7172 = vmatprep.subr.mxu1 %v5909_v26 }
 0x50d   :  { %v5265_v63 = vadd.f32 %v5264_v29, %v5191_v43  ;;  %v8197_v29 = vsub.f32 %v5736_v35, %v8180_v58  ;;  %v8200_v30 = vsub.f32 %v5735_v52, %v8182_v59  ;;  %v8218_v43 = vsub.f32 %v5733_v47, %v8203_v31  ;;  %7145 = vmatprep.subr.mxu0 %v8182_v59 }
 0x50e   :  { %v5338_v10 = vpop.f32.mrf.mxu1  ;;  %v7117_v22 = vpop.f32.mrf.mxu0  ;;  %v5923_v56 = vand.u32 4294901760, %v5922_v55  ;;  %7173 = vmatpush3.msra.mxu1 %v5909_v26  ;;  %v8242_v55 = vand.u32 4294901760, %v5731_v51  ;;  %7146 = vmatpush3.msra.mxu0 %v8182_v59 }
 0x50f   :  { %v5339_v33 = vadd.f32 %v5338_v10, %v5265_v63  ;;  %v8212_v52 = vand.u32 4294901760, %v8197_v29  ;;  %v8215_v38 = vand.u32 4294901760, %v8200_v30  ;;  %v8225_v63 = vand.u32 4294901760, %v8208_v36  ;;  %7174 = vmatprep.subr.mxu1 %v5916_v53  ;;  %7147 = vmatprep.subr.mxu0 %v8190_v6 }
 0x510   :  { %v7112_v35 = vpop.f32.mrf.mxu1  ;;  %v8233_v22 = vand.u32 4294901760, %v8218_v43  ;;  %7175 = vmatpush3.msra.mxu1 %v5916_v53  ;;  %7148 = vmatpush3.msra.mxu0 %v8190_v6 }
 0x511   :  { %8467 = vst [vmem:[#allocation7_spill] sm:$0xff] %v8212_v52  ;;  %8468 = vst [vmem:[#allocation8_spill] sm:$0xff] %v8215_v38  ;;  %v5413_v48 = vadd.f32 %v5412_v49, %v5339_v33  ;;  %v5929_v47 = vsub.f32 %v8197_v29, %v8212_v52  ;;  %v5936_v10 = vsub.f32 %v8200_v30, %v8215_v38  ;;  %v8472_v52 = vmov 0.0   ;;  %7176 = vmatprep.subr.mxu1 %v5923_v56 }
 0x512   :  { %8469 = vst [vmem:[#allocation9_spill] sm:$0xff] %v8225_v63  ;;  %v5484_v2 = vpop.f32.mrf.mxu1  ;;  %8470 = vst [vmem:[#allocation10_spill] sm:$0xff] %v8233_v22  ;;  %v8236_v49 = vsub.f32 %v5732_v9, %v8221_v37  ;;  %v5561_v35 = vrot.slane %v5036_v41, %v7612_v57  ;;  %v5943_v9 = vsub.f32 %v8208_v36, %v8225_v63  ;;  %7149 = vmatprep.subr.mxu0 %v8203_v31 }
 0x513   :  { %v5485_v33 = vadd.f32 %v5484_v2, %v5413_v48  ;;  %v5930_v62 = vand.u32 4294901760, %v5929_v47  ;;  %v8255_v2 = vsub.f32 %v5731_v51, %v8242_v55  ;;  %v5937_v41 = vand.u32 4294901760, %v5936_v10  ;;  %7177 = vmatpush3.msra.mxu1 %v5923_v56  ;;  %7150 = vmatpush3.msra.mxu0 %v8203_v31 }
 0x514   :  { %v7122_v34 = vpop.f32.mrf.mxu1  ;;  %v8249_v38 = vand.u32 4294901760, %v8236_v49  ;;  %v5950_v47 = vsub.f32 %v8218_v43, %v8233_v22  ;;  %v5944_v51 = vand.u32 4294901760, %v5943_v9  ;;  %7151 = vmatprep.subr.mxu0 %v8221_v37 }
 0x515   :  { %v5569_v48 = vcombine.high %v5485_v33, %v8472_v52  ;;  %v5576_v26 = vrot.slane %v5485_v33, %v7612_v57  ;;  %v5568_v34 = vrot.slane %v5554_v40, %v7612_v57  ;;  %v8264_v53 = vand.u32 4294901760, %v8255_v2  ;;  %7178 = vmatprep.subr.mxu1 %v5930_v62  ;;  %7152 = vmatpush3.msra.mxu0 %v8221_v37 }
 0x516   :  { %8471 = vst [vmem:[#allocation11_spill] sm:$0xff] %v8249_v38  ;;  %v5957_v40 = vsub.f32 %v8236_v49, %v8249_v38  ;;  %7179 = vmatpush3.msra.mxu1 %v5930_v62  ;;  %v5951_v56 = vand.u32 4294901760, %v5950_v47  ;;  %7153 = vmatprep.subr.mxu0 %v8242_v55 }
 0x517   :  { %v5583_v63 = vrot.slane %v5569_v48, %v7612_v57  ;;  %v5584_v52 = vcombine.low %v5561_v35, %v5576_v26  ;;  %v5585_v5 = vcombine.high %v5561_v35, %v5576_v26  ;;  %7180 = vmatprep.subr.mxu1 %v5937_v41  ;;  %v5964_v35 = vsub.f32 %v8255_v2, %v8264_v53 }
 0x518   :  { %7181 = vmatpush3.msra.mxu1 %v5937_v41  ;;  %7154 = vmatpush3.msra.mxu0 %v8242_v55 }
 0x519   :  { %v5592_v10 = vrot.slane %v5584_v52, %v7615_v60  ;;  %v5599_v33 = vrot.slane %v5585_v5, %v7615_v60  ;;  %v5600_v48 = vcombine.low %v5568_v34, %v5583_v63  ;;  %v5601_v22 = vcombine.high %v5568_v34, %v5583_v63  ;;  %7182 = vmatprep.subr.mxu1 %v5944_v51 }
 0x51a   :  { %v5958_v52 = vand.u32 4294901760, %v5957_v40  ;;  %7183 = vmatpush3.msra.mxu1 %v5944_v51  ;;  %v5965_v47 = vand.u32 4294901760, %v5964_v35  ;;  %7193 = vmatprep.subr.mxu0 %v8010_v19 }
 0x51b   :  { %v5608_v9 = vrot.slane %v5600_v48, %v7615_v60  ;;  %v5615_v26 = vrot.slane %v5601_v22, %v7615_v60  ;;  %v5670_v38 = vcombine.low %v5592_v10, %v5599_v33  ;;  %v6472_v44 = vcombine.high %v5592_v10, %v5599_v33  ;;  %7184 = vmatprep.subr.mxu1 %v5951_v56 }
 0x51c   :  { %7185 = vmatpush3.msra.mxu1 %v5951_v56  ;;  %v8473_v48 = vcombine.low %v8125_v24, %v8128_v14 }
 0x51d   :  { %v5686_v5 = vcombine.low %v5608_v9, %v5615_v26  ;;  %v6473_v62 = vcombine.high %v5608_v9, %v5615_v26  ;;  %v5677_v63 = vrot.slane %v5670_v38, %v7612_v57  ;;  %v5685_v34 = vrot.slane %v6472_v44, %v7612_v57  ;;  %7186 = vmatprep.subr.mxu1 %v5958_v52 }
 0x51e   :  { %7187 = vmatpush3.msra.mxu1 %v5958_v52 }
 0x51f   :  { %v5693_v22 = vrot.slane %v5686_v5, %v7612_v57  ;;  %v5701_v10 = vrot.slane %v6473_v62, %v7612_v57  ;;  %v5702_v41 = vcombine.low %v5677_v63, %v5685_v34  ;;  %7188 = vmatprep.subr.mxu1 %v5965_v47 }
 0x520   :  { %7189 = vmatpush3.msra.mxu1 %v5965_v47 }
 0x521   :  { %v5710_v40 = vcombine.low %v5693_v22, %v5701_v10  ;;  %v5709_v38 = vrot.slane %v5702_v41, %v7615_v60  ;;  %7228 = vmatprep.subr.mxu1 %v8007_v18 }
 0x523   :  { %v5717_v44 = vrot.slane %v5710_v40, %v7615_v60 }
 0x525   :  { %v5719_v51 = vcombine.high %v5709_v38, %v5717_v44  ;;  %v5718_v33 = vcombine.low %v5709_v38, %v5717_v44 }
 0x527   :  { %5724 = vrot.lane.b32.xlu1 %v5719_v51, %s7387_s22 }
 0x57d   :  { %v5723_v57 = vpop.permute.xlu1 %5722 }
 0x57e   :  { %v5729_v56 = vsel %vm5728_vm4, %v8473_v48, %v5723_v57 }
 0x57f   :  { %v8291_v35 = vand.u32 4294901760, %v5729_v56 }
 0x581   :  { %v5836_v9 = vsub.f32 %v5729_v56, %v8291_v35  ;;  %7190 = vmatprep.mubr.f32.mxu1 %v8291_v35 }
 0x583   :  { %v5837_v60 = vand.u32 4294901760, %v5836_v9 }
 0x585   :  { %v5838_v26 = vsub.f32 %v5836_v9, %v5837_v60 }
 0x587   :  { %v5839_v52 = vand.u32 4294901760, %v5838_v26 }
 0x589   :  { %7155 = vmatprep.mubr.f32.mxu0 %v5839_v52 }
 0x599   :  { %v5725_v5 = vpop.permute.xlu1 %5724 }
 0x59a   :  { %v5730_v62 = vsel %vm5728_vm4, %v5718_v33, %v5725_v5 }
 0x59b   :  { %v8295_v63 = vand.u32 4294901760, %v5730_v62 }
 0x59d   :  { %v8298_v34 = vsub.f32 %v5730_v62, %v8295_v63  ;;  %7191 = vmatmul.mubr.f32.vlgmr.msra.gmra.mxu1 %v8295_v63 }
 0x59e   :  { %7229 = vmatpush3.msra.mxu1 %v8007_v18  ;;  %7260 = vmatprep.mubr.f32.mxu1 %v5837_v60 }
 0x59f   :  { %v5847_v24 = vand.u32 4294901760, %v8298_v34  ;;  %7230 = vmatprep.subr.mxu1 %v8023_v61 }
 0x5a0   :  { %7231 = vmatpush3.msra.mxu1 %v8023_v61 }
 0x5a1   :  { %v5848_v14 = vsub.f32 %v8298_v34, %v5847_v24  ;;  %7232 = vmatprep.subr.mxu1 %v8034_v4 }
 0x5a2   :  { %7233 = vmatpush3.msra.mxu1 %v8034_v4 }
 0x5a3   :  { %7234 = vmatprep.subr.mxu1 %v8050_v7  ;;  %v5849_v47 = vand.u32 4294901760, %v5848_v14 }
 0x5a4   :  { %7235 = vmatpush3.msra.mxu1 %v8050_v7 }
 0x5a5   :  { %7236 = vmatprep.subr.mxu1 %v8085_v46  ;;  %7156 = vmatmul.mubr.f32.vlgmr.msra.gmra.mxu0 %v5849_v47 }
 0x5a6   :  { %7194 = vmatpush3.msra.mxu0 %v8010_v19  ;;  %7237 = vmatpush3.msra.mxu1 %v8085_v46  ;;  %v8475_v19 = vld [vmem:[#allocation6_spill] sm:$0xff] }
 0x5a7   :  { %7195 = vmatprep.subr.mxu0 %v8032_v3  ;;  %7225 = vmatprep.mubr.f32.mxu0 %v5836_v9 }
 0x5a8   :  { %7238 = vmatprep.subr.mxu1 %v8087_v25  ;;  %7196 = vmatpush3.msra.mxu0 %v8032_v3  ;;  %v8478_v3 = vld [vmem:[#allocation9_spill] sm:$0xff] }
 0x5a9   :  { %7239 = vmatpush3.msra.mxu1 %v8087_v25  ;;  %7197 = vmatprep.subr.mxu0 %v8048_v13 }
 0x5aa   :  { %7240 = vmatprep.subr.mxu1 %v8100_v1  ;;  %7198 = vmatpush3.msra.mxu0 %v8048_v13 }
 0x5ab   :  { %7241 = vmatpush3.msra.mxu1 %v8100_v1  ;;  %7199 = vmatprep.subr.mxu0 %v8061_v28 }
 0x5ac   :  { %7242 = vmatprep.subr.mxu1 %v8106_v8  ;;  %7200 = vmatpush3.msra.mxu0 %v8061_v28 }
 0x5ad   :  { %7243 = vmatpush3.msra.mxu1 %v8106_v8  ;;  %7201 = vmatprep.subr.mxu0 %v8095_v0 }
 0x5ae   :  { %7244 = vmatprep.subr.mxu1 %v8118_v17  ;;  %7202 = vmatpush3.msra.mxu0 %v8095_v0 }
 0x5af   :  { %7245 = vmatpush3.msra.mxu1 %v8118_v17  ;;  %7203 = vmatprep.subr.mxu0 %v8098_v50 }
 0x5b0   :  { %7246 = vmatprep.subr.mxu1 %v8133_v21  ;;  %7204 = vmatpush3.msra.mxu0 %v8098_v50 }
 0x5b1   :  { %7247 = vmatpush3.msra.mxu1 %v8133_v21  ;;  %7205 = vmatprep.subr.mxu0 %v8116_v15 }
 0x5b2   :  { %7248 = vmatprep.subr.mxu1 %v8180_v58  ;;  %7206 = vmatpush3.msra.mxu0 %v8116_v15 }
 0x5b3   :  { %7249 = vmatpush3.msra.mxu1 %v8180_v58  ;;  %7207 = vmatprep.subr.mxu0 %v8131_v54 }
 0x5b4   :  { %7250 = vmatprep.subr.mxu1 %v8182_v59  ;;  %7208 = vmatpush3.msra.mxu0 %v8131_v54 }
 0x5b5   :  { %7251 = vmatpush3.msra.mxu1 %v8182_v59  ;;  %7209 = vmatprep.subr.mxu0 %v8144_v32 }
 0x5b6   :  { %7252 = vmatprep.subr.mxu1 %v8190_v6  ;;  %7210 = vmatpush3.msra.mxu0 %v8144_v32 }
 0x5b7   :  { %7253 = vmatpush3.msra.mxu1 %v8190_v6  ;;  %7211 = vmatprep.subr.mxu0 %v8172_v45 }
 0x5b8   :  { %7254 = vmatprep.subr.mxu1 %v8203_v31  ;;  %7212 = vmatpush3.msra.mxu0 %v8172_v45 }
 0x5b9   :  { %7255 = vmatpush3.msra.mxu1 %v8203_v31  ;;  %7213 = vmatprep.subr.mxu0 %v8197_v29 }
 0x5ba   :  { %7256 = vmatprep.subr.mxu1 %v8221_v37  ;;  %7214 = vmatpush3.msra.mxu0 %v8197_v29 }
 0x5bb   :  { %7257 = vmatpush3.msra.mxu1 %v8221_v37  ;;  %7215 = vmatprep.subr.mxu0 %v8200_v30 }
 0x5bc   :  { %7258 = vmatprep.subr.mxu1 %v8242_v55  ;;  %7216 = vmatpush3.msra.mxu0 %v8200_v30 }
 0x5bd   :  { %7259 = vmatpush3.msra.mxu1 %v8242_v55  ;;  %7217 = vmatprep.subr.mxu0 %v8208_v36 }
 0x5be   :  { %7261 = vmatmul.mubr.f32.vlgmr.msra.gmra.mxu1 %v5847_v24  ;;  %7298 = vmatprep.subr.mxu1 %v8007_v18 }
 0x5bf   :  { %7218 = vmatpush3.msra.mxu0 %v8208_v36  ;;  %7299 = vmatpush3.msra.mxu1 %v8007_v18  ;;  %v8474_v18 = vld [vmem:[#allocation5_spill] sm:$0xff] }
 0x5c0   :  { %7330 = vmatprep.mubr.f32.mxu1 %v8291_v35  ;;  %7219 = vmatprep.subr.mxu0 %v8218_v43 }
 0x5c1   :  { %7300 = vmatprep.subr.mxu1 %v8023_v61  ;;  %7220 = vmatpush3.msra.mxu0 %v8218_v43 }
 0x5c2   :  { %7301 = vmatpush3.msra.mxu1 %v8023_v61  ;;  %7221 = vmatprep.subr.mxu0 %v8236_v49  ;;  %v8477_v61 = vld [vmem:[#allocation8_spill] sm:$0xff] }
 0x5c3   :  { %7302 = vmatprep.subr.mxu1 %v8034_v4  ;;  %7222 = vmatpush3.msra.mxu0 %v8236_v49 }
 0x5c4   :  { %7303 = vmatpush3.msra.mxu1 %v8034_v4  ;;  %7223 = vmatprep.subr.mxu0 %v8255_v2  ;;  %v8479_v4 = vld [vmem:[#allocation10_spill] sm:$0xff] }
 0x5c5   :  { %7304 = vmatprep.subr.mxu1 %v8050_v7  ;;  %7224 = vmatpush3.msra.mxu0 %v8255_v2 }
 0x5c6   :  { %7305 = vmatpush3.msra.mxu1 %v8050_v7  ;;  %7226 = vmatmul.mubr.f32.vlgmr.msra.gmra.mxu0 %v8298_v34  ;;  %v6474_v7 = vld [vmem:[%s8448_s6] ss:$0 sm:$0xff]  ;;  %s7388_s6 = smov [#allocation2]  }
 0x5c7   :  { %7263 = vmatprep.subr.mxu0 %v8015_v20  ;;  %7306 = vmatprep.subr.mxu1 %v8085_v46  ;;  %s6445_s28 = sshll.u32 %s7388_s6, 4  ;;  %s6446_s28 = int_to_ptr.vmem [resolvable:$true] %s6445_s28 }
 0x5c8   :  { %7264 = vmatpush3.msra.mxu0 %v8015_v20  ;;  %7295 = vmatprep.mubr.f32.mxu0 %v8291_v35  ;;  %v8476_v20 = vld [vmem:[#allocation7_spill] sm:$0xff]  ;;  %s7359_s29 = scalar_lea.vmem %s6446_s28, 256  ;;  %p7364_p1 = scmp.lt.s32.totalorder %s6446_s28, %s6446_s28 }
 0x5c9   :  { %7307 = vmatpush3.msra.mxu1 %v8085_v46  ;;  %7265 = vmatprep.subr.mxu0 %v8044_v42  ;;  %p7360_p0 = scmp.ne.s32.totalorder %s6446_s28, %s7359_s29  ;;  %p7365_p2 = scmp.lt.s32.totalorder %s7359_s29, %s7359_s29 }
 0x5ca   :  { %7308 = vmatprep.subr.mxu1 %v8087_v25  ;;  %7266 = vmatpush3.msra.mxu0 %v8044_v42  ;;  %v8480_v42 = vld [vmem:[#allocation11_spill] sm:$0xff] }
 0x5cb   :  { %7309 = vmatpush3.msra.mxu1 %v8087_v25  ;;  %7267 = vmatprep.subr.mxu0 %v8058_v27  ;;  %p7366_p3 = por %p7365_p2, %p7364_p1 }
 0x5cc   :  { %7310 = vmatprep.subr.mxu1 %v8100_v1  ;;  %7268 = vmatpush3.msra.mxu0 %v8058_v27 }
 0x5cd   :  { %7311 = vmatpush3.msra.mxu1 %v8100_v1  ;;  %7269 = vmatprep.subr.mxu0 %v8076_v16  ;;  %p7367_p4 = pnand %p7366_p3, %p7360_p0 }
 0x5ce   :  { %7312 = vmatprep.subr.mxu1 %v8106_v8  ;;  %7270 = vmatpush3.msra.mxu0 %v8076_v16 }
 0x5cf   :  { %7313 = vmatpush3.msra.mxu1 %v8106_v8  ;;  %7271 = vmatprep.subr.mxu0 %v8110_v11 }
 0x5d0   :  { %7314 = vmatprep.subr.mxu1 %v8118_v17  ;;  %7272 = vmatpush3.msra.mxu0 %v8110_v11 }
 0x5d1   :  { %7315 = vmatpush3.msra.mxu1 %v8118_v17  ;;  %7273 = vmatprep.subr.mxu0 %v8113_v12 }
 0x5d2   :  { %7316 = vmatprep.subr.mxu1 %v8133_v21  ;;  %7274 = vmatpush3.msra.mxu0 %v8113_v12 }
 0x5d3   :  { %7317 = vmatpush3.msra.mxu1 %v8133_v21  ;;  %7275 = vmatprep.subr.mxu0 %v8141_v23 }
 0x5d4   :  { %7318 = vmatprep.subr.mxu1 %v8180_v58  ;;  %7276 = vmatpush3.msra.mxu0 %v8141_v23 }
 0x5d5   :  { %7319 = vmatpush3.msra.mxu1 %v8180_v58  ;;  %7277 = vmatprep.subr.mxu0 %v8161_v39 }
 0x5d6   :  { %7320 = vmatprep.subr.mxu1 %v8182_v59  ;;  %7278 = vmatpush3.msra.mxu0 %v8161_v39 }
 0x5d7   :  { %7321 = vmatpush3.msra.mxu1 %v8182_v59  ;;  %7279 = vmatprep.subr.mxu0 %v8474_v18 }
 0x5d8   :  { %7322 = vmatprep.subr.mxu1 %v8190_v6  ;;  %7280 = vmatpush3.msra.mxu0 %v8474_v18 }
 0x5d9   :  { %7323 = vmatpush3.msra.mxu1 %v8190_v6  ;;  %7281 = vmatprep.subr.mxu0 %v8475_v19 }
 0x5da   :  { %7324 = vmatprep.subr.mxu1 %v8203_v31  ;;  %7282 = vmatpush3.msra.mxu0 %v8475_v19 }
 0x5db   :  { %7325 = vmatpush3.msra.mxu1 %v8203_v31  ;;  %7283 = vmatprep.subr.mxu0 %v8476_v20 }
 0x5dc   :  { %7326 = vmatprep.subr.mxu1 %v8221_v37  ;;  %7284 = vmatpush3.msra.mxu0 %v8476_v20 }
 0x5dd   :  { %7327 = vmatpush3.msra.mxu1 %v8221_v37  ;;  %7285 = vmatprep.subr.mxu0 %v8477_v61 }
 0x5de   :  { %7328 = vmatprep.subr.mxu1 %v8242_v55  ;;  %7286 = vmatpush3.msra.mxu0 %v8477_v61 }
 0x5df   :  { %7329 = vmatpush3.msra.mxu1 %v8242_v55  ;;  %7287 = vmatprep.subr.mxu0 %v8478_v3 }
 0x5e0   :  { %7331 = vmatmul.mubr.f32.vlgmr.msra.gmra.mxu1 %v8295_v63  ;;  %7288 = vmatpush3.msra.mxu0 %v8478_v3 }
 0x5e1   :  { %7289 = vmatprep.subr.mxu0 %v8479_v4 }
 0x5e2   :  { %7290 = vmatpush3.msra.mxu0 %v8479_v4 }
 0x5e3   :  { %7291 = vmatprep.subr.mxu0 %v8480_v42 }
 0x5e4   :  { %7292 = vmatpush3.msra.mxu0 %v8480_v42 }
 0x5e5   :  { %7293 = vmatprep.subr.mxu0 %v8264_v53 }
 0x5e6   :  { %7294 = vmatpush3.msra.mxu0 %v8264_v53 }
 0x5e7   :  { %7296 = vmatmul.mubr.f32.vlgmr.msra.gmra.mxu0 %v8295_v63 }
 0x65d   :  { %v7192_v27 = vpop.f32.mrf.mxu1 }
 0x65f   :  { %v6002_v0 = vpop.f32.mrf.mxu1 }
 0x665   :  { %v7157_v13 = vpop.f32.mrf.mxu0 }
 0x666   :  { %v5852_v16 = vadd.f32 %v7157_v13, %v6474_v7 }
 0x667   :  { %v5841_v28 = vpop.f32.mrf.mxu0 }
 0x668   :  { %v5842_v25 = vadd.f32 %v6474_v7, %v5841_v28  ;;  %v6009_v50 = vadd.f32 %v7192_v27, %v5852_v16 }
 0x66a   :  { %v6003_v12 = vadd.f32 %v6002_v0, %v5842_v25 }
 0x67e   :  { %v7262_v1 = vpop.f32.mrf.mxu1 }
 0x680   :  { %v6208_v17 = vpop.f32.mrf.mxu1 }
 0x686   :  { %v7227_v46 = vpop.f32.mrf.mxu0 }
 0x687   :  { %v6120_v11 = vadd.f32 %v7227_v46, %v6009_v50 }
 0x688   :  { %v6112_v8 = vpop.f32.mrf.mxu0 }
 0x689   :  { %v6113_v15 = vadd.f32 %v6112_v8, %v6003_v12  ;;  %v6217_v54 = vadd.f32 %v7262_v1, %v6120_v11 }
 0x68b   :  { %v6209_v39 = vadd.f32 %v6208_v17, %v6113_v15 }
 0x6a0   :  { %v7332_v21 = vpop.f32.mrf.mxu1 }
 0x6a2   :  { %v6428_v6 = vpop.f32.mrf.mxu1 }
 0x6a7   :  { %v7297_v23 = vpop.f32.mrf.mxu0 }
 0x6a8   :  { %v6342_v32 = vadd.f32 %v7297_v23, %v6217_v54 }
 0x6a9   :  { %v6335_v45 = vpop.f32.mrf.mxu0 }
 0x6aa   :  { %v6435_v58 = vadd.f32 %v7332_v21, %v6342_v32  ;;  %v6336_v59 = vadd.f32 %v6335_v45, %v6209_v39 }
 0x6ac   :  { %6439 = vst.msk [vmem:[#allocation2 + $0x8] sm:$0xff] %vm40_vm0, %v6435_v58  ;;  %v6429_v29 = vadd.f32 %v6428_v6, %v6336_v59 }
 0x6ae   :  { %6438 = vst.msk [vmem:[#allocation2] sm:$0xff] %vm40_vm0, %v6429_v29 }
 0x6af   :  { %7370 = shalt.err (!%p7367_p4)
}
 0x6b0   :  { %s7389_s30 = smov 128   ;;  %s7390_s8 = smov 8  }
 0x6b1   :  { %6451 = dma.vmem_to_hbm [thread:$0]  %s6446_s28, 256, %s8449_s7, [#allocation3], %s7389_s30, %s7389_s30, %s7390_s8  }
 0x6b2   :  { %7379 = dma.done.wait [#allocation3], 256  }
 0x6b3   :  { %7380 = vsyncadd [#allocation3], 4294967040 }
 0x6b4   :  { %6455 = vsyncpa [#allocation3], 1 }

</bundles_post_ra>
